<compile_context>
chip_gen: v5e
topology: v5e:2x2
jax: 0.10.0
libtpu: 0.0.40
codegen_flags: <defaults>
</compile_context>

<pallas_src>
import functools

import jax
import jax.numpy as jnp
from jax.experimental import pallas as pl
from jax.experimental.pallas import tpu as pltpu


DTYPE = jnp.bfloat16          # weights / activations; accumulation stays f32


# ---------------------------------------------------------------------------
# Generation-aware knobs (fixed 48 MiB under-used v5e/v6e's 128 MiB and crowded
# v7x's 64 MiB physical VMEM).
# ---------------------------------------------------------------------------

def _vmem_capacity_bytes():
    try:
        cap = getattr(pltpu.get_tpu_info(), "vmem_capacity_bytes", None)
        if cap:
            return int(cap)
    except Exception:
        pass
    return 64 * 1024 * 1024            # conservative default (v7x per-core VMEM)


_VMEM_CAP = _vmem_capacity_bytes()
_BIG_VMEM = _VMEM_CAP >= 96 * 1024 * 1024       # v5e / v6e (128 MiB) vs v7x (64 MiB)
_VMEM_LIMIT = (96 if _BIG_VMEM else 40) * 1024 * 1024
_TM_CAP = 512 if _BIG_VMEM else 256    # token-row tile cap (bigger tiles on 128 MiB parts)
_TQ_CAP = 512 if _BIG_VMEM else 256    # attention query tile cap
_TN_CAP = 512                          # matmul output-column tile cap
_TK_CAP = 512                          # matmul contraction tile cap
_TKV_CAP = 512                         # attention KV tile cap


# ---------------------------------------------------------------------------
# Tiling helpers
# ---------------------------------------------------------------------------

def _aligned_divisor(dim, cap, align):
    """Largest multiple-of-`align` divisor of `dim` that is <= cap, else None."""
    t = (cap // align) * align
    while t >= align:
        if dim % t == 0:
            return t
        t -= align
    return None


def _col_tile(dim, cap):
    """Lane-axis tile: prefer 256-aligned (v6e/v7x MXU width), then 128-aligned."""
    if dim <= cap:
        return dim
    for align in (256, 128):
        t = _aligned_divisor(dim, cap, align)
        if t is not None:
            return t
    return dim          # fallback: keep the whole dim resident (always legal)


def _row_tile(dim, cap):
    """Sublane-axis (token-row) tile. Guarantees >= 2 grid steps when possible so
    a 'parallel' grid axis can be sharded across v7x's two TensorCores."""
    cap = min(cap, dim)
    if dim % 16 == 0:
        cap = min(cap, dim // 2)
    if dim <= cap:
        return dim
    t = _aligned_divisor(dim, cap, 8)
    return t if t is not None else dim


def _kv_tile(dim, cap):
    if dim <= cap:
        return dim
    for align in (256, 128, 8):
        t = _aligned_divisor(dim, cap, align)
        if t is not None:
            return t
    return dim


# ---------------------------------------------------------------------------
# Single-buffering of constant-index blocks (probed once, outside any trace)
# ---------------------------------------------------------------------------

def _probe_kernel(x_ref, o_ref):
    o_ref[...] = x_ref[...]


def _probe_single_buffer():
    try:
        x = jnp.zeros((8, 128), jnp.float32)
        fn = pl.pallas_call(
            _probe_kernel,
            out_shape=jax.ShapeDtypeStruct((16, 128), jnp.float32),
            grid=(2,),
            in_specs=[pl.BlockSpec((8, 128), lambda i: (0, 0),
                                   pipeline_mode=pl.Buffered(1))],
            out_specs=pl.BlockSpec((8, 128), lambda i: (i, 0)),
        )
        jax.block_until_ready(fn(x))
        return True
    except Exception:
        return False


_SINGLE_BUFFER = _probe_single_buffer()


def _const_spec(block_shape):
    """BlockSpec for blocks whose index_map never changes (weights, biases, LN scales).
    Single-buffered when supported: they are fetched once, so the second pipeline
    buffer is pure VMEM waste (material on v7x's 64 MiB)."""
    nd = len(block_shape)
    idx = lambda *args: (0,) * nd
    if _SINGLE_BUFFER:
        return pl.BlockSpec(block_shape, idx, pipeline_mode=pl.Buffered(1))
    return pl.BlockSpec(block_shape, idx)


# ---------------------------------------------------------------------------
# Tiled linear + bias  (QKV projection)
# ---------------------------------------------------------------------------

def _matmul_bias_kernel(x_ref, w_ref, b_ref, o_ref, acc_ref):
    @pl.when(pl.program_id(2) == 0)
    def _():
        acc_ref[...] = jnp.zeros_like(acc_ref)

    acc_ref[...] += jnp.dot(x_ref[...], w_ref[...],
                            preferred_element_type=jnp.float32)

    @pl.when(pl.program_id(2) == pl.num_programs(2) - 1)
    def _():
        o_ref[...] = (acc_ref[...] + b_ref[...].astype(jnp.float32)
                      ).astype(o_ref.dtype)


def linear_bias(x, w, b):
    S, K = x.shape
    N = w.shape[1]
    tm = _row_tile(S, _TM_CAP)
    tn = _col_tile(N, _TN_CAP)
    tk = _col_tile(K, _TK_CAP)
    nbytes = jnp.dtype(x.dtype).itemsize
    ce = pl.CostEstimate(flops=2 * S * N * K, transcendentals=0,
                         bytes_accessed=(S * K + K * N + S * N) * nbytes)
    return pl.pallas_call(
        _matmul_bias_kernel,
        out_shape=jax.ShapeDtypeStruct((S, N), x.dtype),
        grid_spec=pltpu.PrefetchScalarGridSpec(
            num_scalar_prefetch=0,
            grid=(S // tm, N // tn, K // tk),
            in_specs=[
                pl.BlockSpec((tm, tk), lambda i, j, k: (i, k)),
                pl.BlockSpec((tk, tn), lambda i, j, k: (k, j)),
                pl.BlockSpec((1, tn), lambda i, j, k: (0, j)),
            ],
            out_specs=pl.BlockSpec((tm, tn), lambda i, j, k: (i, j)),
            scratch_shapes=[pltpu.VMEM((tm, tn), jnp.float32)],
        ),
        compiler_params=pltpu.CompilerParams(
            dimension_semantics=("parallel", "parallel", "arbitrary"),
            vmem_limit_bytes=_VMEM_LIMIT),
        cost_estimate=ce,
    )(x, w, b)


# ---------------------------------------------------------------------------
# Flash-style multi-head attention, reading head columns straight out of the
# (S, 3H) fused QKV buffer.  Online softmax over KV tiles (S-independent VMEM).
# ---------------------------------------------------------------------------

def _heads_per_block(num_heads, head_dim, max_bw=512):
    """Pack heads so each block is lane-dense (width multiple of 128, <= max_bw)."""
    best = None
    for hpb in range(1, num_heads + 1):
        bw = hpb * head_dim
        if num_heads % hpb or bw % 128 or bw > max_bw:
            continue
        best = hpb
    assert best is not None, (
        f"cannot pack heads into 128-lane-dense blocks: "
        f"num_heads={num_heads}, head_dim={head_dim}")
    return best


def _mha_flash_kernel(q_ref, k_ref, v_ref, o_ref, m_ref, l_ref, acc_ref,
                      *, scale, head_dim, hpb):
    kv = pl.program_id(2)

    @pl.when(kv == 0)
    def _():
        m_ref[...] = jnp.full_like(m_ref, -jnp.inf)
        l_ref[...] = jnp.zeros_like(l_ref)
        acc_ref[...] = jnp.zeros_like(acc_ref)

    for h in range(hpb):
        lo = h * head_dim
        q = q_ref[:, lo:lo + head_dim]
        k = k_ref[:, lo:lo + head_dim]
        v = v_ref[:, lo:lo + head_dim]
        # scores: contract the shared head_dim axis directly (no materialized k.T)
        s = jax.lax.dot_general(q, k, (((1,), (1,)), ((), ())),
                                preferred_element_type=jnp.float32) * scale
        m_prev = m_ref[h]                                       # (tq, 1)
        m_new = jnp.maximum(m_prev, jnp.max(s, axis=-1, keepdims=True))
        alpha = jnp.exp(m_prev - m_new)
        p = jnp.exp(s - m_new)
        l_ref[h] = alpha * l_ref[h] + jnp.sum(p, axis=-1, keepdims=True)
        acc_ref[:, lo:lo + head_dim] = (
            alpha * acc_ref[:, lo:lo + head_dim]
            + jnp.dot(p.astype(v.dtype), v, preferred_element_type=jnp.float32))
        m_ref[h] = m_new

    @pl.when(kv == pl.num_programs(2) - 1)
    def _():
        for h in range(hpb):
            lo = h * head_dim
            # exact divide (finalize is (tq, head_dim) once per tile; keeps parity
            # with the torch softmax reference)
            o_ref[:, lo:lo + head_dim] = (
                acc_ref[:, lo:lo + head_dim] / l_ref[h]).astype(o_ref.dtype)


def mha_from_qkv(qkv, *, num_heads, hidden_size):
    """qkv: (S, 3H) laid out [Q | K | V] (vLLM QKVParallelLinear). Returns (S, H).
    NOTE: bidirectional ENCODER_ONLY attention over a single unpadded sequence
    (no attention mask), matching the flattened-token vLLM layout."""
    S = qkv.shape[0]
    head_dim = hidden_size // num_heads
    hpb = _heads_per_block(num_heads, head_dim)
    bw = hpb * head_dim                           # lane-dense block width
    n_hp = num_heads // hpb                       # head-group count
    tq = _row_tile(S, _TQ_CAP)
    tkv = _kv_tile(S, _TKV_CAP)
    scale = head_dim ** -0.5
    kernel = functools.partial(_mha_flash_kernel, scale=scale,
                               head_dim=head_dim, hpb=hpb)
    nbytes = jnp.dtype(qkv.dtype).itemsize
    ce = pl.CostEstimate(
        flops=4 * S * S * hidden_size,
        transcendentals=num_heads * S * S,
        bytes_accessed=S * hidden_size * (2 + 2 * (S // tq)) * nbytes)
    # Column-block units of width bw: Q group g -> block g, K -> n_hp+g, V -> 2*n_hp+g.
    return pl.pallas_call(
        kernel,
        out_shape=jax.ShapeDtypeStruct((S, hidden_size), qkv.dtype),
        grid_spec=pltpu.PrefetchScalarGridSpec(
            num_scalar_prefetch=0,
            grid=(n_hp, S // tq, S // tkv),
            in_specs=[
                pl.BlockSpec((tq, bw), lambda g, i, kv: (i, g)),
                pl.BlockSpec((tkv, bw), lambda g, i, kv: (kv, n_hp + g)),
                pl.BlockSpec((tkv, bw), lambda g, i, kv: (kv, 2 * n_hp + g)),
            ],
            out_specs=pl.BlockSpec((tq, bw), lambda g, i, kv: (i, g)),
            scratch_shapes=[
                pltpu.VMEM((hpb, tq, 1), jnp.float32),   # running max   m
                pltpu.VMEM((hpb, tq, 1), jnp.float32),   # running sum   l
                pltpu.VMEM((tq, bw), jnp.float32),       # un-normalized PV accumulator
            ],
        ),
        compiler_params=pltpu.CompilerParams(
            dimension_semantics=("parallel", "parallel", "arbitrary"),
            vmem_limit_bytes=_VMEM_LIMIT),
        cost_estimate=ce,
    )(qkv, qkv, qkv)


def _mha_reference(qkv, num_heads, hidden_size):
    """Pure-JAX reference used only for the correctness check in __main__."""
    S = qkv.shape[0]
    hd = hidden_size // num_heads
    q, k, v = jnp.split(qkv.astype(jnp.float32), 3, axis=-1)
    q = q.reshape(S, num_heads, hd).transpose(1, 0, 2)
    k = k.reshape(S, num_heads, hd).transpose(1, 0, 2)
    v = v.reshape(S, num_heads, hd).transpose(1, 0, 2)
    s = jnp.einsum("hqd,hkd->hqk", q, k) * hd ** -0.5
    p = jax.nn.softmax(s, axis=-1)
    o = jnp.einsum("hqk,hkd->hqd", p, v)
    return o.transpose(1, 0, 2).reshape(S, hidden_size)


# ---------------------------------------------------------------------------
# Fused epilogues (LayerNorm helpers)
# ---------------------------------------------------------------------------

def _layernorm_f32(h, g_ref, beta_ref, eps):
    mean = jnp.mean(h, axis=-1, keepdims=True)
    ctr = h - mean
    var = jnp.mean(ctr * ctr, axis=-1, keepdims=True)
    return (ctr * jax.lax.rsqrt(var + eps) * g_ref[...].astype(jnp.float32)
            + beta_ref[...].astype(jnp.float32))


def _dense_res_ln_kernel(x_ref, w_ref, b_ref, res_ref, g_ref, beta_ref, o_ref,
                         *, eps):
    h = jnp.dot(x_ref[...], w_ref[...], preferred_element_type=jnp.float32)
    h = h + b_ref[...].astype(jnp.float32) + res_ref[...].astype(jnp.float32)
    o_ref[...] = _layernorm_f32(h, g_ref, beta_ref, eps).astype(o_ref.dtype)


def dense_residual_layernorm(x, w, b, residual, gamma, beta, *, eps):
    """BertSelfOutput: LayerNorm(x @ W + b + residual), tiled over token rows."""
    S, K = x.shape
    N = w.shape[1]
    tm = _row_tile(S, _TM_CAP)
    return pl.pallas_call(
        functools.partial(_dense_res_ln_kernel, eps=eps),
        out_shape=jax.ShapeDtypeStruct((S, N), x.dtype),
        grid_spec=pltpu.PrefetchScalarGridSpec(
            num_scalar_prefetch=0,
            grid=(S // tm,),
            in_specs=[
                pl.BlockSpec((tm, K), lambda i: (i, 0)),
                _const_spec((K, N)),          # Wo resident, single-buffered
                _const_spec((1, N)),
                pl.BlockSpec((tm, N), lambda i: (i, 0)),   # residual tile
                _const_spec((1, N)),
                _const_spec((1, N)),
            ],
            out_specs=pl.BlockSpec((tm, N), lambda i: (i, 0)),
        ),
        compiler_params=pltpu.CompilerParams(
            dimension_semantics=("parallel",),
            vmem_limit_bytes=_VMEM_LIMIT),
    )(x, w, b, residual, gamma, beta)


def _ffn_kernel(x_ref, wi_ref, bi_ref, wd_ref, bd_ref, g_ref, beta_ref, o_ref,
                *, eps):
    x = x_ref[...]
    # BertIntermediate: gelu(x @ Wi + bi)  -- exact erf GELU (torch nn.GELU default)
    h = jnp.dot(x, wi_ref[...], preferred_element_type=jnp.float32)
    h = jax.nn.gelu(h + bi_ref[...].astype(jnp.float32), approximate=False)
    # BertOutput: LayerNorm(h @ Wd + bd + x); (S, I) never hits HBM and the residual
    # re-uses the x tile (no duplicate input).
    y = jnp.dot(h.astype(wd_ref.dtype), wd_ref[...],
                preferred_element_type=jnp.float32)
    y = y + bd_ref[...].astype(jnp.float32) + x.astype(jnp.float32)
    o_ref[...] = _layernorm_f32(y, g_ref, beta_ref, eps).astype(o_ref.dtype)


def ffn_fused(x, wi, bi, wd, bd, gamma, beta, *, eps):
    S, H = x.shape
    I = wi.shape[1]
    tm = _row_tile(S, _TM_CAP)
    nbytes = jnp.dtype(x.dtype).itemsize
    ce = pl.CostEstimate(flops=4 * S * H * I, transcendentals=S * I,
                         bytes_accessed=(2 * S * H + 2 * H * I) * nbytes)
    return pl.pallas_call(
        functools.partial(_ffn_kernel, eps=eps),
        out_shape=jax.ShapeDtypeStruct((S, H), x.dtype),
        grid_spec=pltpu.PrefetchScalarGridSpec(
            num_scalar_prefetch=0,
            grid=(S // tm,),
            in_specs=[
                pl.BlockSpec((tm, H), lambda i: (i, 0)),    # x tile (also residual)
                _const_spec((H, I)),                        # Wi resident, 1-buffered
                _const_spec((1, I)),
                _const_spec((I, H)),                        # Wd resident, 1-buffered
                _const_spec((1, H)),
                _const_spec((1, H)),                        # gamma
                _const_spec((1, H)),                        # beta
            ],
            out_specs=pl.BlockSpec((tm, H), lambda i: (i, 0)),
        ),
        compiler_params=pltpu.CompilerParams(
            dimension_semantics=("parallel",),
            vmem_limit_bytes=_VMEM_LIMIT),
        cost_estimate=ce,
    )(x, wi, bi, wd, bd, gamma, beta)


# ---------------------------------------------------------------------------
# Embedding LayerNorm; pooler + classifier (folded into XLA per perf review)
# ---------------------------------------------------------------------------

def _ln_kernel(x_ref, g_ref, b_ref, o_ref, *, eps):
    o_ref[...] = _layernorm_f32(x_ref[...].astype(jnp.float32),
                                g_ref, b_ref, eps).astype(o_ref.dtype)


def layernorm(x, gamma, beta, *, eps):
    S, H = x.shape
    tm = _row_tile(S, _TM_CAP)
    return pl.pallas_call(
        functools.partial(_ln_kernel, eps=eps),
        out_shape=jax.ShapeDtypeStruct((S, H), x.dtype),
        grid_spec=pltpu.PrefetchScalarGridSpec(
            num_scalar_prefetch=0,
            grid=(S // tm,),
            in_specs=[pl.BlockSpec((tm, H), lambda i: (i, 0)),
                      _const_spec((1, H)),
                      _const_spec((1, H))],
            out_specs=pl.BlockSpec((tm, H), lambda i: (i, 0)),
        ),
        compiler_params=pltpu.CompilerParams(
            dimension_semantics=("parallel",),
            vmem_limit_bytes=_VMEM_LIMIT),
    )(x, gamma, beta)


def pooler_classifier(hidden_states, head, *, num_labels):
    # Folded into XLA (perf review): an M=1 matmul in a dedicated pallas_call uses
    # 1/8 sublanes and a sliver of the MXU -- the launch costs more than the compute.
    first = hidden_states[0:1, :].astype(jnp.float32)          # BertPooler: token 0
    pooled = jnp.tanh(first @ head["wp"].astype(jnp.float32)
                      + head["bp"].astype(jnp.float32))
    logits = (pooled @ head["wc"].astype(jnp.float32)
              + head["bc"].astype(jnp.float32))
    return logits[:, :num_labels]


# ---------------------------------------------------------------------------
# Model forward
# ---------------------------------------------------------------------------

def bert_layer(hidden_states, lp, *, num_heads, eps):
    S, H = hidden_states.shape
    # TODO(synk): for small-S latency-bound serving shapes, fuse the QKV projection
    # into the attention kernel (K-tiled accumulator per head group) to skip the
    # (S, 3H) HBM round trip and one pallas_call launch.
    qkv = linear_bias(hidden_states, lp["wqkv"], lp["bqkv"])        # (S, 3H)
    attn = mha_from_qkv(qkv, num_heads=num_heads, hidden_size=H)    # (S, H)
    attn_out = dense_residual_layernorm(attn, lp["wo"], lp["bo"],
                                        hidden_states,
                                        lp["ln1_g"], lp["ln1_b"], eps=eps)
    return ffn_fused(attn_out, lp["wi"], lp["bi"], lp["wd"], lp["bd"],
                     lp["ln2_g"], lp["ln2_b"], eps=eps)


def bert_embeddings(input_ids, position_ids, token_type_ids, ep, *, eps):
    # TODO(synk): the three table gathers run in XLA (jnp.take); a Pallas version
    # would need a manual DMA-gather with scalar-prefetched indices.
    emb = (jnp.take(ep["word"], input_ids, axis=0)
           + jnp.take(ep["token_type"], token_type_ids, axis=0)
           + jnp.take(ep["position"], position_ids, axis=0))
    return layernorm(emb.astype(DTYPE), ep["ln_g"], ep["ln_b"], eps=eps)


def bert_forward(input_ids, position_ids, token_type_ids, params, *,
                 num_heads, eps):
    h = bert_embeddings(input_ids, position_ids, token_type_ids,
                        params["embeddings"], eps=eps)
    for lp in params["layers"]:
        h = bert_layer(h, lp, num_heads=num_heads, eps=eps)
    return h                                                # encoder hidden states


# ---------------------------------------------------------------------------
# Parameter construction (deterministic, synthetic)
# ---------------------------------------------------------------------------

def make_params(key, *, vocab_size, type_vocab_size, max_position, hidden_size,
                intermediate_size, num_layers, num_labels, dtype=DTYPE):
    sd = 0.02
    H, I = hidden_size, intermediate_size
    keys = jax.random.split(key, 2 + num_layers)

    def normal(k, shape):
        return (jax.random.normal(k, shape, jnp.float32) * sd).astype(dtype)

    ek = jax.random.split(keys[0], 3)
    embeddings = {
        "word": normal(ek[0], (vocab_size, H)),
        "token_type": normal(ek[1], (type_vocab_size, H)),
        "position": normal(ek[2], (max_position, H)),
        "ln_g": jnp.ones((1, H), dtype),
        "ln_b": jnp.zeros((1, H), dtype),
    }

    layers = []
    for li in range(num_layers):
        lk = jax.random.split(keys[1 + li], 8)
        layers.append({
            "wqkv": normal(lk[0], (H, 3 * H)),   # columns [Q|K|V] (vLLM QKVParallelLinear)
            "bqkv": normal(lk[1], (1, 3 * H)),
            "wo": normal(lk[2], (H, H)),
            "bo": normal(lk[3], (1, H)),
            "ln1_g": jnp.ones((1, H), dtype),
            "ln1_b": jnp.zeros((1, H), dtype),
            "wi": normal(lk[4], (H, I)),
            "bi": normal(lk[5], (1, I)),
            "wd": normal(lk[6], (I, H)),
            "bd": normal(lk[7], (1, H)),
            "ln2_g": jnp.ones((1, H), dtype),
            "ln2_b": jnp.zeros((1, H), dtype),
        })

    hk = jax.random.split(keys[1 + num_layers], 4)
    head = {"wp": normal(hk[0], (H, H)), "bp": normal(hk[1], (1, H)),
            "wc": normal(hk[2], (H, num_labels)), "bc": normal(hk[3], (1, num_labels))}

    return {"embeddings": embeddings, "layers": layers, "head": head}


if __name__ == "__main__":
    # Small BERT-like config: hidden=128, heads=2 (head_dim=64), ffn=256, seq=128.
    hidden_size = 128
    num_heads = 2
    intermediate_size = 256
    seq_len = 128
    num_layers = 2
    vocab_size = 1000
    type_vocab_size = 2
    max_position = 512
    num_labels = 2
    layer_norm_eps = 1e-12

    key = jax.random.PRNGKey(0)
    k_ids, k_params, k_mha = jax.random.split(key, 3)
    params = make_params(k_params, vocab_size=vocab_size,
                         type_vocab_size=type_vocab_size,
                         max_position=max_position, hidden_size=hidden_size,
                         intermediate_size=intermediate_size,
                         num_layers=num_layers, num_labels=num_labels)

    # Unit-check the flash-attention kernel against a pure-JAX reference.
    qkv_test = (jax.random.normal(k_mha, (seq_len, 3 * hidden_size), jnp.float32)
                * 0.5).astype(DTYPE)
    mha_out = mha_from_qkv(qkv_test, num_heads=num_heads, hidden_size=hidden_size)
    mha_ref = _mha_reference(qkv_test, num_heads, hidden_size)
    mha_err = float(jnp.max(jnp.abs(mha_out.astype(jnp.float32) - mha_ref)))
    assert mha_err < 2e-2, f"flash attention mismatch vs reference: {mha_err}"

    input_ids = jax.random.randint(k_ids, (seq_len,), 0, vocab_size,
                                   dtype=jnp.int32)
    position_ids = jnp.arange(seq_len, dtype=jnp.int32)
    token_type_ids = jnp.zeros((seq_len,), jnp.int32)

    fwd = jax.jit(functools.partial(bert_forward, num_heads=num_heads,
                                    eps=layer_norm_eps))
    hidden = fwd(input_ids, position_ids, token_type_ids, params)
    logits = jax.jit(functools.partial(pooler_classifier,
                                       num_labels=num_labels))(
        hidden, params["head"])
    hidden, logits = jax.block_until_ready((hidden, logits))

    assert hidden.shape == (seq_len, hidden_size)
    assert logits.shape == (1, num_labels)
    assert bool(jnp.all(jnp.isfinite(hidden.astype(jnp.float32))))
    assert bool(jnp.all(jnp.isfinite(logits)))
    print("KERNEL_OK")
</pallas_src>

<mosaic_0001>
module attributes {stable_mosaic.version = 11 : i64} {
  func.func @_probe_kernel(%arg0: i32, %arg1: memref<8x128xf32, #tpu.memory_space<vmem>>, %arg2: memref<8x128xf32, #tpu.memory_space<vmem>>) attributes {dimension_semantics = [#tpu.dimension_semantics<arbitrary>], iteration_bounds = array<i64: 2>, scalar_prefetch = 0 : i64, scratch_operands = 0 : i64, tpu.core_type = #tpu.core_type<tc>, window_params = [{pipeline_mode = #tpu.pipeline_mode<synchronous>, transform_indices = @transform_0, window_bounds = array<i64: 8, 128>}, {transform_indices = @transform_1, window_bounds = array<i64: 8, 128>}]} {
    %c0 = arith.constant 0 : index
    %c0_0 = arith.constant 0 : index
    %0 = vector.load %arg1[%c0, %c0_0] : memref<8x128xf32, #tpu.memory_space<vmem>>, vector<8x128xf32>
    %c0_1 = arith.constant 0 : index
    %c0_2 = arith.constant 0 : index
    %1 = vector.load %arg2[%c0_1, %c0_2] : memref<8x128xf32, #tpu.memory_space<vmem>>, vector<8x128xf32>
    tpu.vector_store %arg2[%c0_1, %c0_2], %0 {strides = array<i32>} : memref<8x128xf32, #tpu.memory_space<vmem>>, vector<8x128xf32>,
    return
  }
  func.func @transform_0(%arg0: i32) -> (i32, i32) {
    %c0_i32 = arith.constant 0 : i32
    %c0_i32_0 = arith.constant 0 : i32
    %c0_i32_1 = arith.constant 0 : i32
    return %c0_i32, %c0_i32_0 : i32, i32
  }
  func.func @transform_1(%arg0: i32) -> (i32, i32) {
    %c0_i32 = arith.constant 0 : i32
    %c0_i32_0 = arith.constant 0 : i32
    return %arg0, %c0_i32 : i32, i32
  }
}

module attributes {stable_mosaic.version = 11 : i64} {
  func.func @_mha_flash_kernel(%arg0: i32, %arg1: i32, %arg2: i32, %arg3: memref<64x128xbf16, #tpu.memory_space<vmem>>, %arg4: memref<128x128xbf16, #tpu.memory_space<vmem>>, %arg5: memref<128x128xbf16, #tpu.memory_space<vmem>>, %arg6: memref<64x128xbf16, #tpu.memory_space<vmem>>, %arg7: memref<2x64x1xf32, #tpu.memory_space<vmem>>, %arg8: memref<2x64x1xf32, #tpu.memory_space<vmem>>, %arg9: memref<64x128xf32, #tpu.memory_space<vmem>>) attributes {dimension_semantics = [#tpu.dimension_semantics<parallel>, #tpu.dimension_semantics<parallel>, #tpu.dimension_semantics<arbitrary>], iteration_bounds = array<i64: 1, 2, 1>, scalar_prefetch = 0 : i64, scratch_operands = 3 : i64, tpu.core_type = #tpu.core_type<tc>, window_params = [{transform_indices = @transform_0, window_bounds = array<i64: 64, 128>}, {transform_indices = @transform_1, window_bounds = array<i64: 128, 128>}, {transform_indices = @transform_2, window_bounds = array<i64: 128, 128>}, {transform_indices = @transform_3, window_bounds = array<i64: 64, 128>}]} {
    %c0_i32 = arith.constant 0 : i32
    %0 = arith.cmpi eq, %arg2, %c0_i32 : i32
    %1 = arith.extui %0 : i1 to i32
    %c0_i32_0 = arith.constant 0 : i32
    %2 = arith.cmpi ne, %1, %c0_i32_0 : i32
    scf.if %2 {
      %cst_53 = arith.constant 0xFF800000 : f32
      %76 = vector.broadcast %cst_53 : f32 to vector<2x64x1xf32>
      %c0_54 = arith.constant 0 : index
      %c0_55 = arith.constant 0 : index
      %c0_56 = arith.constant 0 : index
      %77 = vector.load %arg7[%c0_54, %c0_55, %c0_56] : memref<2x64x1xf32, #tpu.memory_space<vmem>>, vector<2x64x1xf32>
      tpu.vector_store %arg7[%c0_54, %c0_55, %c0_56], %76 {strides = array<i32>} : memref<2x64x1xf32, #tpu.memory_space<vmem>>, vector<2x64x1xf32>,
      %cst_57 = arith.constant 0.000000e+00 : f32
      %78 = vector.broadcast %cst_57 : f32 to vector<2x64x1xf32>
      %c0_58 = arith.constant 0 : index
      %c0_59 = arith.constant 0 : index
      %c0_60 = arith.constant 0 : index
      %79 = vector.load %arg8[%c0_58, %c0_59, %c0_60] : memref<2x64x1xf32, #tpu.memory_space<vmem>>, vector<2x64x1xf32>
      tpu.vector_store %arg8[%c0_58, %c0_59, %c0_60], %78 {strides = array<i32>} : memref<2x64x1xf32, #tpu.memory_space<vmem>>, vector<2x64x1xf32>,
      %cst_61 = arith.constant 0.000000e+00 : f32
      %80 = vector.broadcast %cst_61 : f32 to vector<64x128xf32>
      %c0_62 = arith.constant 0 : index
      %c0_63 = arith.constant 0 : index
      %81 = vector.load %arg9[%c0_62, %c0_63] : memref<64x128xf32, #tpu.memory_space<vmem>>, vector<64x128xf32>
      tpu.vector_store %arg9[%c0_62, %c0_63], %80 {strides = array<i32>} : memref<64x128xf32, #tpu.memory_space<vmem>>, vector<64x128xf32>,
    } else {
    }
    %c0 = arith.constant 0 : index
    %c0_1 = arith.constant 0 : index
    %3 = vector.load %arg3[%c0, %c0_1] : memref<64x128xbf16, #tpu.memory_space<vmem>>, vector<64x64xbf16>
    %c0_2 = arith.constant 0 : index
    %c0_3 = arith.constant 0 : index
    %4 = vector.load %arg4[%c0_2, %c0_3] : memref<128x128xbf16, #tpu.memory_space<vmem>>, vector<128x64xbf16>
    %c0_4 = arith.constant 0 : index
    %c0_5 = arith.constant 0 : index
    %5 = vector.load %arg5[%c0_4, %c0_5] : memref<128x128xbf16, #tpu.memory_space<vmem>>, vector<128x64xbf16>
    %cst = arith.constant dense<0.000000e+00> : vector<64x128xf32>
    %6 = tpu.matmul %3, %4, %cst {dimension_numbers = #tpu.dot_dimension_numbers<[1], [1], [0], [0], [0, 0, 1, 0], [], []>} : vector<64x64xbf16>, vector<128x64xbf16>, vector<64x128xf32> -> vector<64x128xf32>
    %cst_6 = arith.constant 1.250000e-01 : f32
    %7 = vector.broadcast %cst_6 : f32 to vector<64x128xf32>
    %8 = arith.mulf %6, %7 : vector<64x128xf32>
    %c0_7 = arith.constant 0 : index
    %c0_8 = arith.constant 0 : index
    %c0_9 = arith.constant 0 : index
    %9 = vector.load %arg7[%c0_7, %c0_8, %c0_9] : memref<2x64x1xf32, #tpu.memory_space<vmem>>, vector<1x64x1xf32>
    %10 = vector.shape_cast %9 : vector<1x64x1xf32> to vector<64x1xf32>
    %cst_10 = arith.constant dense<0xFF800000> : vector<64xf32>
    %11 = vector.multi_reduction <maximumf>, %8, %cst_10 [1] : vector<64x128xf32> to vector<64xf32>
    %12 = vector.shape_cast %11 : vector<64xf32> to vector<64x1xf32>
    %13 = arith.maximumf %10, %12 : vector<64x1xf32>
    %14 = arith.subf %10, %13 : vector<64x1xf32>
    %15 = math.exp %14 : vector<64x1xf32>
    %16 = vector.broadcast %13 : vector<64x1xf32> to vector<64x128xf32>
    %17 = arith.subf %8, %16 : vector<64x128xf32>
    %18 = math.exp %17 : vector<64x128xf32>
    %c0_11 = arith.constant 0 : index
    %c0_12 = arith.constant 0 : index
    %c0_13 = arith.constant 0 : index
    %19 = vector.load %arg8[%c0_11, %c0_12, %c0_13] : memref<2x64x1xf32, #tpu.memory_space<vmem>>, vector<1x64x1xf32>
    %20 = vector.shape_cast %19 : vector<1x64x1xf32> to vector<64x1xf32>
    %21 = arith.mulf %15, %20 : vector<64x1xf32>
    %cst_14 = arith.constant dense<0.000000e+00> : vector<64xf32>
    %22 = vector.multi_reduction <add>, %18, %cst_14 [1] : vector<64x128xf32> to vector<64xf32>
    %23 = vector.shape_cast %22 : vector<64xf32> to vector<64x1xf32>
    %24 = arith.addf %21, %23 : vector<64x1xf32>
    %c0_15 = arith.constant 0 : index
    %c0_16 = arith.constant 0 : index
    %c0_17 = arith.constant 0 : index
    %25 = vector.load %arg8[%c0_15, %c0_16, %c0_17] : memref<2x64x1xf32, #tpu.memory_space<vmem>>, vector<1x64x1xf32>
    %26 = vector.shape_cast %25 : vector<1x64x1xf32> to vector<64x1xf32>
    %27 = vector.shape_cast %24 : vector<64x1xf32> to vector<1x64x1xf32>
    tpu.vector_store %arg8[%c0_15, %c0_16, %c0_17], %27 {strides = array<i32>} : memref<2x64x1xf32, #tpu.memory_space<vmem>>, vector<1x64x1xf32>,
    %c0_18 = arith.constant 0 : index
    %c0_19 = arith.constant 0 : index
    %28 = vector.load %arg9[%c0_18, %c0_19] : memref<64x128xf32, #tpu.memory_space<vmem>>, vector<64x64xf32>
    %29 = vector.broadcast %15 : vector<64x1xf32> to vector<64x64xf32>
    %30 = arith.mulf %29, %28 : vector<64x64xf32>
    %31 = arith.truncf %18 : vector<64x128xf32> to vector<64x128xbf16>
    %cst_20 = arith.constant dense<0.000000e+00> : vector<64x64xf32>
    %32 = tpu.matmul %31, %5, %cst_20 {dimension_numbers = #tpu.dot_dimension_numbers<[1], [0], [0], [1], [0, 0, 1, 1], [], []>} : vector<64x128xbf16>, vector<128x64xbf16>, vector<64x64xf32> -> vector<64x64xf32>
    %33 = arith.addf %30, %32 : vector<64x64xf32>
    %c0_21 = arith.constant 0 : index
    %c0_22 = arith.constant 0 : index
    %34 = vector.load %arg9[%c0_21, %c0_22] : memref<64x128xf32, #tpu.memory_space<vmem>>, vector<64x64xf32>
    tpu.vector_store %arg9[%c0_21, %c0_22], %33 {strides = array<i32>} : memref<64x128xf32, #tpu.memory_space<vmem>>, vector<64x64xf32>,
    %c0_23 = arith.constant 0 : index
    %c0_24 = arith.constant 0 : index
    %c0_25 = arith.constant 0 : index
    %35 = vector.load %arg7[%c0_23, %c0_24, %c0_25] : memref<2x64x1xf32, #tpu.memory_space<vmem>>, vector<1x64x1xf32>
    %36 = vector.shape_cast %35 : vector<1x64x1xf32> to vector<64x1xf32>
    %37 = vector.shape_cast %13 : vector<64x1xf32> to vector<1x64x1xf32>
    tpu.vector_store %arg7[%c0_23, %c0_24, %c0_25], %37 {strides = array<i32>} : memref<2x64x1xf32, #tpu.memory_space<vmem>>, vector<1x64x1xf32>,
    %c0_26 = arith.constant 0 : index
    %c64 = arith.constant 64 : index
    %38 = vector.load %arg3[%c0_26, %c64] : memref<64x128xbf16, #tpu.memory_space<vmem>>, vector<64x64xbf16>
    %c0_27 = arith.constant 0 : index
    %c64_28 = arith.constant 64 : index
    %39 = vector.load %arg4[%c0_27, %c64_28] : memref<128x128xbf16, #tpu.memory_space<vmem>>, vector<128x64xbf16>
    %c0_29 = arith.constant 0 : index
    %c64_30 = arith.constant 64 : index
    %40 = vector.load %arg5[%c0_29, %c64_30] : memref<128x128xbf16, #tpu.memory_space<vmem>>, vector<128x64xbf16>
    %cst_31 = arith.constant dense<0.000000e+00> : vector<64x128xf32>
    %41 = tpu.matmul %38, %39, %cst_31 {dimension_numbers = #tpu.dot_dimension_numbers<[1], [1], [0], [0], [0, 0, 1, 0], [], []>} : vector<64x64xbf16>, vector<128x64xbf16>, vector<64x128xf32> -> vector<64x128xf32>
    %cst_32 = arith.constant 1.250000e-01 : f32
    %42 = vector.broadcast %cst_32 : f32 to vector<64x128xf32>
    %43 = arith.mulf %41, %42 : vector<64x128xf32>
    %c1 = arith.constant 1 : index
    %c0_33 = arith.constant 0 : index
    %c0_34 = arith.constant 0 : index
    %44 = vector.load %arg7[%c1, %c0_33, %c0_34] : memref<2x64x1xf32, #tpu.memory_space<vmem>>, vector<1x64x1xf32>
    %45 = vector.shape_cast %44 : vector<1x64x1xf32> to vector<64x1xf32>
    %cst_35 = arith.constant dense<0xFF800000> : vector<64xf32>
    %46 = vector.multi_reduction <maximumf>, %43, %cst_35 [1] : vector<64x128xf32> to vector<64xf32>
    %47 = vector.shape_cast %46 : vector<64xf32> to vector<64x1xf32>
    %48 = arith.maximumf %45, %47 : vector<64x1xf32>
    %49 = arith.subf %45, %48 : vector<64x1xf32>
    %50 = math.exp %49 : vector<64x1xf32>
    %51 = vector.broadcast %48 : vector<64x1xf32> to vector<64x128xf32>
    %52 = arith.subf %43, %51 : vector<64x128xf32>
    %53 = math.exp %52 : vector<64x128xf32>
    %c1_36 = arith.constant 1 : index
    %c0_37 = arith.constant 0 : index
    %c0_38 = arith.constant 0 : index
    %54 = vector.load %arg8[%c1_36, %c0_37, %c0_38] : memref<2x64x1xf32, #tpu.memory_space<vmem>>, vector<1x64x1xf32>
    %55 = vector.shape_cast %54 : vector<1x64x1xf32> to vector<64x1xf32>
    %56 = arith.mulf %50, %55 : vector<64x1xf32>
    %cst_39 = arith.constant dense<0.000000e+00> : vector<64xf32>
    %57 = vector.multi_reduction <add>, %53, %cst_39 [1] : vector<64x128xf32> to vector<64xf32>
    %58 = vector.shape_cast %57 : vector<64xf32> to vector<64x1xf32>
    %59 = arith.addf %56, %58 : vector<64x1xf32>
    %c1_40 = arith.constant 1 : index
    %c0_41 = arith.constant 0 : index
    %c0_42 = arith.constant 0 : index
    %60 = vector.load %arg8[%c1_40, %c0_41, %c0_42] : memref<2x64x1xf32, #tpu.memory_space<vmem>>, vector<1x64x1xf32>
    %61 = vector.shape_cast %60 : vector<1x64x1xf32> to vector<64x1xf32>
    %62 = vector.shape_cast %59 : vector<64x1xf32> to vector<1x64x1xf32>
    tpu.vector_store %arg8[%c1_40, %c0_41, %c0_42], %62 {strides = array<i32>} : memref<2x64x1xf32, #tpu.memory_space<vmem>>, vector<1x64x1xf32>,
    %c0_43 = arith.constant 0 : index
    %c64_44 = arith.constant 64 : index
    %63 = vector.load %arg9[%c0_43, %c64_44] : memref<64x128xf32, #tpu.memory_space<vmem>>, vector<64x64xf32>
    %64 = vector.broadcast %50 : vector<64x1xf32> to vector<64x64xf32>
    %65 = arith.mulf %64, %63 : vector<64x64xf32>
    %66 = arith.truncf %53 : vector<64x128xf32> to vector<64x128xbf16>
    %cst_45 = arith.constant dense<0.000000e+00> : vector<64x64xf32>
    %67 = tpu.matmul %66, %40, %cst_45 {dimension_numbers = #tpu.dot_dimension_numbers<[1], [0], [0], [1], [0, 0, 1, 1], [], []>} : vector<64x128xbf16>, vector<128x64xbf16>, vector<64x64xf32> -> vector<64x64xf32>
    %68 = arith.addf %65, %67 : vector<64x64xf32>
    %c0_46 = arith.constant 0 : index
    %c64_47 = arith.constant 64 : index
    %69 = vector.load %arg9[%c0_46, %c64_47] : memref<64x128xf32, #tpu.memory_space<vmem>>, vector<64x64xf32>
    tpu.vector_store %arg9[%c0_46, %c64_47], %68 {strides = array<i32>} : memref<64x128xf32, #tpu.memory_space<vmem>>, vector<64x64xf32>,
    %c1_48 = arith.constant 1 : index
    %c0_49 = arith.constant 0 : index
    %c0_50 = arith.constant 0 : index
    %70 = vector.load %arg7[%c1_48, %c0_49, %c0_50] : memref<2x64x1xf32, #tpu.memory_space<vmem>>, vector<1x64x1xf32>
    %71 = vector.shape_cast %70 : vector<1x64x1xf32> to vector<64x1xf32>
    %72 = vector.shape_cast %48 : vector<64x1xf32> to vector<1x64x1xf32>
    tpu.vector_store %arg7[%c1_48, %c0_49, %c0_50], %72 {strides = array<i32>} : memref<2x64x1xf32, #tpu.memory_space<vmem>>, vector<1x64x1xf32>,
    %c0_i32_51 = arith.constant 0 : i32
    %73 = arith.cmpi eq, %arg2, %c0_i32_51 : i32
    %74 = arith.extui %73 : i1 to i32
    %c0_i32_52 = arith.constant 0 : i32
    %75 = arith.cmpi ne, %74, %c0_i32_52 : i32
    scf.if %75 {
      %c0_53 = arith.constant 0 : index
      %c0_54 = arith.constant 0 : index
      %76 = vector.load %arg9[%c0_53, %c0_54] : memref<64x128xf32, #tpu.memory_space<vmem>>, vector<64x64xf32>
      %c0_55 = arith.constant 0 : index
      %c0_56 = arith.constant 0 : index
      %c0_57 = arith.constant 0 : index
      %77 = vector.load %arg8[%c0_55, %c0_56, %c0_57] : memref<2x64x1xf32, #tpu.memory_space<vmem>>, vector<1x64x1xf32>
      %78 = vector.shape_cast %77 : vector<1x64x1xf32> to vector<64x1xf32>
      %79 = vector.broadcast %78 : vector<64x1xf32> to vector<64x64xf32>
      %80 = arith.divf %76, %79 : vector<64x64xf32>
      %81 = arith.truncf %80 : vector<64x64xf32> to vector<64x64xbf16>
      %c0_58 = arith.constant 0 : index
      %c0_59 = arith.constant 0 : index
      %82 = vector.load %arg6[%c0_58, %c0_59] : memref<64x128xbf16, #tpu.memory_space<vmem>>, vector<64x64xbf16>
      tpu.vector_store %arg6[%c0_58, %c0_59], %81 {strides = array<i32>} : memref<64x128xbf16, #tpu.memory_space<vmem>>, vector<64x64xbf16>,
      %c0_60 = arith.constant 0 : index
      %c64_61 = arith.constant 64 : index
      %83 = vector.load %arg9[%c0_60, %c64_61] : memref<64x128xf32, #tpu.memory_space<vmem>>, vector<64x64xf32>
      %c1_62 = arith.constant 1 : index
      %c0_63 = arith.constant 0 : index
      %c0_64 = arith.constant 0 : index
      %84 = vector.load %arg8[%c1_62, %c0_63, %c0_64] : memref<2x64x1xf32, #tpu.memory_space<vmem>>, vector<1x64x1xf32>
      %85 = vector.shape_cast %84 : vector<1x64x1xf32> to vector<64x1xf32>
      %86 = vector.broadcast %85 : vector<64x1xf32> to vector<64x64xf32>
      %87 = arith.divf %83, %86 : vector<64x64xf32>
      %88 = arith.truncf %87 : vector<64x64xf32> to vector<64x64xbf16>
      %c0_65 = arith.constant 0 : index
      %c64_66 = arith.constant 64 : index
      %89 = vector.load %arg6[%c0_65, %c64_66] : memref<64x128xbf16, #tpu.memory_space<vmem>>, vector<64x64xbf16>
      tpu.vector_store %arg6[%c0_65, %c64_66], %88 {strides = array<i32>} : memref<64x128xbf16, #tpu.memory_space<vmem>>, vector<64x64xbf16>,
    } else {
    }
    return
  }
  func.func @transform_0(%arg0: i32, %arg1: i32, %arg2: i32) -> (i32, i32) {
    %c0_i32 = arith.constant 0 : i32
    return %arg1, %arg0 : i32, i32
  }
  func.func @transform_1(%arg0: i32, %arg1: i32, %arg2: i32) -> (i32, i32) {
    %c1_i32 = arith.constant 1 : i32
    %0 = arith.addi %c1_i32, %arg0 : i32
    %c0_i32 = arith.constant 0 : i32
    return %arg2, %0 : i32, i32
  }
  func.func @transform_2(%arg0: i32, %arg1: i32, %arg2: i32) -> (i32, i32) {
    %c2_i32 = arith.constant 2 : i32
    %0 = arith.addi %c2_i32, %arg0 : i32
    %c0_i32 = arith.constant 0 : i32
    return %arg2, %0 : i32, i32
  }
  func.func @transform_3(%arg0: i32, %arg1: i32, %arg2: i32) -> (i32, i32) {
    %c0_i32 = arith.constant 0 : i32
    return %arg1, %arg0 : i32, i32
  }
}

</mosaic_0001>

<bundles_post_ra>
// kernel: tpu_custom_call.1
= control target key start
LH: loop header
LB: loop body
LE: loop exit
PB: predicated region body
PF: predicated region fallthrough
CT: control target
= control target key end

     0   :  { %6 = vsyncpa [#allocation3], 0  ;;  %s440_s0 = inlined_call_operand.hbm [shape: f32[8,128], index: 0, kind: input, shape index: {}]   ;;  %s441_s1 = inlined_call_operand.hbm [shape: f32[16,128], index: 1, kind: output, shape index: {}]  }
   0x1   :  { %7 = vsyncpa [#allocation4], 0 }
   0x2   :  { %9 = vsyncpa [#allocation4 + $0x1], 0  ;;  %s356_s6 = smov 0   ;;  %s358_s7 = smov 0  }
   0x3   :  { %s360_s8 = smov 0   ;;  %s362_s9 = smov 0  }
   0x4 LB: > { %s377_s10 = sadd.s32 4294967295, %s343_s9   ;;  %s187_s11 = sadd.s32 4294967294, %s343_s9   ;;  %s343_s9 = sphi %s362_s9, %s447_s9   ;;  %s339_s8 = sphi %s360_s8, %s446_s8   ;;  %s335_s7 = sphi %s358_s7, %s445_s7   ;;  %s331_s6 = sphi %s356_s6, %s444_s6  }
   0x5   : > { %s381_s12 = sadd.s32 1, %s343_s9   ;;  %s43_s13 = sadd.s32 1, %s339_s8 }
   0x6   : > { %s40_s14 = ssub.s32 %s343_s9, %s381_s12  ;;  %p53_p0 = scmp.ne.s32.totalorder %s339_s8, %s335_s7 }
   0x7   : > { %p41_p1 = scmp.eq.s32.totalorder %s40_s14, 0  ;;  %p54_p2 = scmp.eq.s32.totalorder %s377_s10, 1 }
   0x8   : > { %p59_p3 = scmp.ne.s32.totalorder %s335_s7, %s331_s6  ;;  %p60_p4 = scmp.eq.s32.totalorder %s187_s11, 1 }
   0x9   : > { %s392_s15 = scalar_select %p41_p1, %s339_s8, %s43_s13  }
   0xa   : > { %p394_p5 = por %p54_p2, %p53_p0  ;;  %p398_p6 = por %p60_p4, %p59_p3 }
   0xb   : > { %p188_p7 = scmp.ge.s32.totalorder %s343_s9, 1  ;;  %p67_p8 = scmp.lt.s32.totalorder %s343_s9, 3 }
   0xc   : > { %p211_p9 = scmp.eq.s32.totalorder %s377_s10, 0  ;;  %s79_s20 = sshll.u32 %s440_s0, 4  ;;  %s80_s20 = int_to_ptr.hbm [resolvable:$true] %s79_s20 }
   0xd   : > { %p68_p10 = pnand %p188_p7, %p67_p8  ;;  %s345_s21 = smov [#allocation2]  }
   0xe   : > { %s81_s22 = sshll.u32 %s345_s21, 4  ;;  %s82_s22 = int_to_ptr.vmem [resolvable:$true] %s81_s22 }
   0xf   : > { %p203_p11 = pneg %p68_p10  ;;  %94 = sbr.rel (%p68_p10) target bundleno = 37 (0x25), region = 24 }
  0x11   : > { %p204_p12 = pnand %p211_p9, %p203_p11 }
  0x13   : > { %206 = dma.hbm_to_vmem [thread:$0]  (!%p204_p12), %s80_s20, 128, %s82_s22, [#allocation3]  }
  0x14   : > { %322 = dma.done.wait (%p211_p9), [#allocation3], 128  }
  0x15   : > { %324 = vsyncadd (%p211_p9), [#allocation3], 4294967168  ;;  %s107_s23 = sand.u32 1, %s335_s7   ;;  %s194_s24 = sshll.u32 %s377_s10, 3  ;;  %v110_v0 = vld [vmem:[#allocation2] sm:$0xff] }
  0x16   : > { %s192_s25 = sshll.u32 %s107_s23, 3  ;;  %s123_s28 = scalar_lea.hbm %s441_s1, %s194_s24 }
  0x17   : > { %s109_s29 = scalar_lea.vmem [#allocation5], %s192_s25  ;;  %s127_s2 = sshll.u32 %s123_s28, 4  ;;  %s128_s2 = int_to_ptr.hbm [resolvable:$true] %s127_s2 }
  0x18   : > { %s125_s30 = sshll.u32 %s109_s29, 4  ;;  %111 = vst [vmem:[%s109_s29] sm:$0xff] %v110_v0  ;;  %s113_s3 = scalar_lea.sflag [#allocation4], %s107_s23  ;;  %s126_s30 = int_to_ptr.vmem [resolvable:$true] %s125_s30 }
  0x19   : > { %s291_s4 = sshra.s32 %s128_s2, 4  ;;  %s297_s13 = scalar_lea.hbm %s441_s1, 16  ;;  %s292_s4 = int_to_ptr.hbm [resolvable:$true] %s291_s4 }
  0x1a   : > { %s293_s5 = scalar_lea.hbm %s292_s4, 8  ;;  %p298_p2 = scmp.lt.s32.totalorder %s292_s4, %s441_s1 }
  0x1b   : > { %p294_p13 = scmp.ne.s32.totalorder %s292_s4, %s293_s5  ;;  %p299_p3 = scmp.lt.s32.totalorder %s297_s13, %s293_s5 }
  0x1d   : > { %p295_p0 = pnand %p294_p13, %p394_p5  ;;  %p300_p4 = por %p299_p3, %p298_p2 }
  0x1f   : > { %p296_p1 = pneg %p295_p0 }
  0x21   : > { %p301_p7 = pnand %p300_p4, %p296_p1 }
  0x23   : > { %304 = shalt.err (!%p301_p7)
}
  0x24   : > { %201 = dma.vmem_to_hbm [thread:$0]  (%p394_p5), %s126_s30, 128, %s128_s2, %s113_s3  }
  0x25 PF: > { %p213_p8 = scmp.ge.s32.totalorder %s343_s9, 2  ;;  %s139_s19 = sand.u32 1, %s331_s6  }
  0x26   : > { %s140_s20 = scalar_lea.sflag [#allocation4], %s139_s19 }
  0x27   : > { %p208_p9 = pnand %p213_p8, %p398_p6 }
  0x29   : > { %p209_p10 = pneg %p208_p9 }
  0x2b   : > { %326 = dma.done.wait (%p209_p10), %s140_s20, 128  }
  0x2c   : > { %328 = vsyncadd (%p209_p10), %s140_s20, 4294967168  ;;  %p12_p11 = scmp.ge.s32.totalorder %s381_s12, 4   ;;  %s444_s6 = smov %s335_s7 }
  0x2d   : > { %s445_s7 = smov %s339_s8  ;;  %s446_s8 = smov %s392_s15 }
  0x2e   : > { %s447_s9 = smov %s381_s12  ;;  %14 = sbr.rel (!%p12_p11) target bundleno = 4 (0x4), region = 61 }
  0x33   :  { %146 = vsyncpa [#allocation3], 1 }
  0x34   :  { %148 = vsyncpa [#allocation3 + $0x1], 1 }
  0x35   :  { %149 = vsyncpa [#allocation4], 1 }
  0x36   :  { %151 = vsyncpa [#allocation4 + $0x1], 1 }

// kernel: tpu_custom_call.1
= control target key start
LH: loop header
LB: loop body
LE: loop exit
PB: predicated region body
PF: predicated region fallthrough
CT: control target
= control target key end

     0   :  { %s3269_s0 = inlined_call_operand.hbm [shape: bf16[128,384], index: 0, kind: input, shape index: {}]   ;;  %s3270_s1 = inlined_call_operand.hbm [shape: bf16[128,384], index: 1, kind: input, shape index: {}]   ;;  %s3271_s2 = inlined_call_operand.hbm [shape: bf16[128,384], index: 2, kind: input, shape index: {}]   ;;  %s3272_s3 = inlined_call_operand.hbm [shape: bf16[128,128], index: 3, kind: output, shape index: {}]  }
   0x1   :  { %3275 = sst [smem:[#allocation15_spill]] %s3270_s1 }
   0x2   :  { %8 = vsyncpa [#allocation6], 0 }
   0x3   :  { %10 = vsyncpa [#allocation6 + $0x1], 0 }
   0x4   :  { %11 = vsyncpa [#allocation9], 0 }
   0x5   :  { %12 = vsyncpa [#allocation7], 0 }
   0x6   :  { %14 = vsyncpa [#allocation7 + $0x1], 0  ;;  %s2562_s12 = smov 0   ;;  %s2564_s13 = smov 0  }
   0x7   :  { %s2566_s14 = smov 0   ;;  %s2568_s15 = smov 0  }
   0x8   :  { %s2570_s16 = smov 0   ;;  %s2572_s17 = smov 0  }
   0x9 LB: > { %s1934_s18 = sadd.s32 4294967295, %s2530_s17   ;;  %s1935_s19 = sadd.s32 4294967294, %s2530_s17   ;;  %s2530_s17 = sphi %s2572_s17, %s20_s17   ;;  %s2526_s16 = sphi %s2570_s16, %s3296_s16   ;;  %s2522_s15 = sphi %s2568_s15, %s3295_s15   ;;  %s2518_s14 = sphi %s2566_s14, %s3294_s14   ;;  %s2514_s13 = sphi %s2564_s13, %s3293_s13   ;;  %s2510_s12 = sphi %s2562_s12, %s3292_s12  }
   0xa   : > { %p61_p0 = scmp.ne.s32.totalorder %s2514_s13, %s2510_s12  ;;  %p2596_p1 = scmp.eq.s32.totalorder %s1934_s18, 0 }
   0xb   : > { %p2600_p2 = scmp.eq.s32.totalorder %s1934_s18, 1  ;;  %p153_p3 = scmp.eq.s32.totalorder %s1935_s19, 1 }
   0xc   : > { %p2606_p4 = por %p2596_p1, %p61_p0  ;;  %p1936_p5 = scmp.ge.s32.totalorder %s2530_s17, 1 }
   0xd   : > { %p2611_p6 = por %p153_p3, %p61_p0  ;;  %p160_p7 = scmp.lt.s32.totalorder %s2530_s17, 3 }
   0xe   : > { %s3280_s1 = sld [smem:[#allocation15_spill]]  ;;  %s2532_s29 = smov [#allocation8]  }
   0xf   : > { %p2619_p8 = pnand %p1936_p5, %p160_p7  ;;  %s179_s30 = sshll.u32 %s2532_s29, 4  ;;  %s180_s30 = int_to_ptr.vmem [resolvable:$true] %s179_s30 }
  0x10   : > { %p1939_p11 = scmp.ge.s32.totalorder %s2530_s17, 2  ;;  %s1854_s6 = scalar_lea.hbm %s3271_s2, 8 }
  0x11   : > { %p2176_p9 = pneg %p2619_p8  ;;  %s3273_s7 = smov 192  }
  0x12   : > { %s3274_s8 = smov 64   ;;  %s2535_s9 = smov 4  }
  0x13   : > { %p2177_p10 = pnand %p2176_p9, %p2596_p1  ;;  %s197_s10 = sshll.u32 %s1854_s6, 4  ;;  %s198_s10 = int_to_ptr.hbm [resolvable:$true] %s197_s10 }
  0x14   : > { %s1849_s26 = scalar_lea.hbm %s3280_s1, 4  ;;  %s2536_s11 = smov [#allocation10]  }
  0x15   : > { %s177_s28 = sshll.u32 %s1849_s26, 4  ;;  %s199_s18 = sshll.u32 %s2536_s11, 4  ;;  %s178_s28 = int_to_ptr.hbm [resolvable:$true] %s177_s28  ;;  %s200_s18 = int_to_ptr.vmem [resolvable:$true] %s199_s18 }
  0x16   : > { %2179 = dma.hbm_to_vmem [thread:$0]  (!%p2177_p10), %s178_s28, 1024, %s180_s30, [#allocation9], %s3273_s7, %s3274_s8, %s2535_s9  }
  0x17   : > { %2182 = dma.hbm_to_vmem [thread:$0]  (!%p2177_p10), %s198_s10, 1024, %s200_s18, [#allocation9], %s3273_s7, %s3274_s8, %s2535_s9  }
  0x18   : > { %s48_s19 = sadd.s32 1, %s2518_s14  ;;  %s35_s24 = sadd.s32 1, %s2526_s16 }
  0x19   : > { %p55_p12 = scmp.ne.s32.totalorder %s2518_s14, %s2514_s13  ;;  %p37_p13 = scmp.ge.s32.totalorder %s35_s24, 2 }
  0x1a   : > { %p56_p0 = scmp.eq.s32.totalorder %s2530_s17, 0  ;;  %p2193_p5 = scmp.lt.s32.totalorder %s2530_s17, 2 }
  0x1b   : > { %p2644_p3 = por %p2600_p2, %p55_p12  ;;  %s3298_s24 = smov (%p37_p13, %s35_s24), 0 }
  0x1c   : > { %p2651_p7 = por %p56_p0, %p55_p12  ;;  %s213_s28 = sand.u32 1, %s2518_s14  }
  0x1d   : > { %s43_s29 = ssub.s32 %s2526_s16, %s3298_s24  ;;  %s1940_s30 = sshll.u32 %s213_s28, 5 }
  0x1e   : > { %p46_p9 = scmp.eq.s32.totalorder %s43_s29, 0  ;;  %s2163_s4 = smul.u32 96, %s2526_s16 }
  0x1f   : > { %s217_s11 = scalar_lea.vmem [#allocation5], %s1940_s30  ;;  %p2184_p2 = pnand %p2193_p5, %p2651_p7 }
  0x20   : > { %s2660_s21 = scalar_select %p46_p9, %s2518_s14, %s48_s19  }
  0x21   : > { %s224_s10 = scalar_lea.hbm %s3269_s0, %s2163_s4  ;;  %s227_s18 = sshll.u32 %s217_s11, 4  ;;  %s228_s18 = int_to_ptr.vmem [resolvable:$true] %s227_s18 }
  0x22   : > { %s225_s7 = sshll.u32 %s224_s10, 4  ;;  %s214_s8 = scalar_lea.sflag [#allocation6], %s213_s28  ;;  %s226_s7 = int_to_ptr.hbm [resolvable:$true] %s225_s7 }
  0x23   : > { %s3284_s1 = smov 64   ;;  %s3285_s29 = smov 192  }
  0x24   : > { %2186 = dma.hbm_to_vmem [thread:$0]  (!%p2184_p2), %s226_s7, 512, %s228_s18, %s214_s8, %s3285_s29, %s3284_s1, %s2535_s9  }
  0x25   : > { %239 = sbr.rel (%p2619_p8) target bundleno = 1163 (0x48b), region = 32  ;;  %s2675_s19 = sand.u32 (!%p2619_p8), 1, %s2514_s13  }
  0x26   : > { %s1945_s30 = sshll.u32 (!%p2619_p8), %s2675_s19, 5  ;;  %s242_s4 = scalar_lea.sflag (!%p2619_p8), [#allocation6], %s2675_s19 }
  0x27   : > { %s2681_s26 = scalar_lea.vmem (!%p2619_p8), [#allocation5], %s1945_s30 }
  0x2a   : > { %2497 = dma.done.wait (%p2606_p4), %s242_s4, 512  }
  0x2b   : > { %2499 = vsyncadd (%p2606_p4), %s242_s4, 4294966784 }
  0x2c   : > { %2501 = dma.done.wait (%p2596_p1), [#allocation9], 2048  }
  0x2d   : > { %2503 = vsyncadd (%p2596_p1), [#allocation9], 4294965248  ;;  %vm430_vm0 = vcmask 523264   ;;  %v2153_v0 = vld [vmem:[#allocation8 + $0x38] sm:$0xff]  ;;  %v2151_v2 = vld [vmem:[#allocation8 + $0x28] sm:$0xff]  ;;  %s2537_s1 = smov 64  }
  0x2e   : > { %v2133_v1 = vld [vmem:[#allocation8 + $0x38] sm:$0xff]  ;;  %956 = vrot.lane.b32.xlu0 %v2153_v0, %s2537_s1  ;;  %952 = vrot.lane.b32.xlu1 %v2151_v2, %s2537_s1  ;;  %v2132_v4 = vld [vmem:[#allocation8 + $0x30] sm:$0xff]  ;;  %v2150_v6 = vld [vmem:[#allocation8 + $0x20] sm:$0xff]  ;;  %vm289_vm1 = vcmask 7168   ;;  %vm1394_vm2 = vcmask 1048064   ;;  %vm1598_vm11 = vcmask 519168  }
  0x2f   : > { %v465_v3 = vsel %vm430_vm0, %v2133_v1, 0  ;;  %v2152_v5 = vld [vmem:[#allocation8 + $0x30] sm:$0xff]  ;;  %v462_v7 = vsel %vm430_vm0, %v2132_v4, 0  ;;  %v2131_v8 = vld [vmem:[#allocation8 + $0x28] sm:$0xff]  ;;  %v2149_v11 = vld [vmem:[#allocation8 + $0x18] sm:$0xff]  ;;  %vm1791_vm12 = vcmask 1043968  }
  0x30   : > { %467 = vmatpush.bf16.xpose.msra.mxu0 %v465_v3  ;;  %v2147_v9 = vld [vmem:[#allocation8 + $0x8] sm:$0xff]  ;;  %v459_v10 = vsel %vm430_vm0, %v2131_v8, 0  ;;  %v2146_v12 = vld [vmem:[#allocation8] sm:$0xff]  ;;  %948 = vrot.lane.b32.xlu2 %v2149_v11, %s2537_s1  ;;  %v2148_v15 = vld [vmem:[#allocation8 + $0x10] sm:$0xff]  ;;  %s3085_s20 = scalar_lea.vmem [#allocation11], %s1945_s30  ;;  %s2162_s22 = sshll.u32 %s2522_s15, 5 }
  0x31   : > { %v2130_v13 = vld [vmem:[#allocation8 + $0x20] sm:$0xff]  ;;  %v2129_v16 = vld [vmem:[#allocation8 + $0x18] sm:$0xff]  ;;  %v2143_v18 = vld [vmem:[%s2681_s26 + $0x8] sm:$0xff]  ;;  %s1813_s8 = scalar_lea.hbm %s3272_s3, %s2162_s22  ;;  %s1814_s15 = sshll.u32 %s3085_s20, 4  ;;  %s1815_s15 = int_to_ptr.vmem [resolvable:$true] %s1814_s15 }
  0x32   : > { %v456_v14 = vsel %vm430_vm0, %v2130_v13, 0  ;;  %v453_v17 = vsel %vm430_vm0, %v2129_v16, 0  ;;  %v2128_v19 = vld [vmem:[#allocation8 + $0x10] sm:$0xff]  ;;  %v2127_v21 = vld [vmem:[#allocation8 + $0x8] sm:$0xff]  ;;  %v2142_v23 = vld [vmem:[%s2681_s26] sm:$0xff]  ;;  %s1816_s9 = sshll.u32 %s1813_s8, 4  ;;  %s1817_s9 = int_to_ptr.hbm [resolvable:$true] %s1816_s9 }
  0x33   : > { %v450_v20 = vsel %vm430_vm0, %v2128_v19, 0  ;;  %v447_v22 = vsel %vm430_vm0, %v2127_v21, 0  ;;  %v2126_v24 = vld [vmem:[#allocation8] sm:$0xff]  ;;  %v2123_v27 = vld [vmem:[%s2681_s26 + $0x8] sm:$0xff]  ;;  %v2144_v28 = vld [vmem:[%s2681_s26 + $0x10] sm:$0xff]  ;;  %v2539_v19 = vmov 0  }
  0x34   : > { %v444_v25 = vsel %vm430_vm0, %v2126_v24, 0  ;;  %v2122_v26 = vld [vmem:[%s2681_s26] sm:$0xff]  ;;  %v2160_v29 = vld [vmem:[#allocation10 + $0x30] sm:$0xff]  ;;  %v2145_v30 = vld [vmem:[%s2681_s26 + $0x18] sm:$0xff]  ;;  %2255 = vset.pattern.permute.xlu1 %v2539_v19  ;;  %2256 = vset.pattern.permute.xlu2 %v2539_v19  ;;  %s1801_s28 = scalar_lea.sflag [#allocation7], %s2675_s19  ;;  %s2458_s5 = sshra.s32 %s1817_s9, 4  ;;  %s2459_s5 = int_to_ptr.hbm [resolvable:$true] %s2458_s5 }
  0x35   : > { %v2124_v33 = vld [vmem:[%s2681_s26 + $0x10] sm:$0xff]  ;;  %v2154_v34 = vld [vmem:[#allocation10] sm:$0xff]  ;;  %v2161_v35 = vld [vmem:[#allocation10 + $0x38] sm:$0xff]  ;;  %2257 = vset.pattern.permute.xlu0 %v2539_v19  ;;  %s2460_s6 = scalar_lea.hbm %s2459_s5, 32  ;;  %s2464_s18 = scalar_lea.hbm %s3272_s3, 64 }
  0x36   : > { %954 = vrot.lane.b32.xlu0 %v2152_v5, %s2537_s1  ;;  %950 = vrot.lane.b32.xlu1 %v2150_v6, %s2537_s1  ;;  %v2159_v39 = vld [vmem:[#allocation10 + $0x28] sm:$0xff]  ;;  %v2158_v42 = vld [vmem:[#allocation10 + $0x20] sm:$0xff]  ;;  %v2125_v43 = vld [vmem:[%s2681_s26 + $0x18] sm:$0xff]  ;;  %p2461_p1 = scmp.ne.s32.totalorder %s2459_s5, %s2460_s6  ;;  %p2465_p10 = scmp.lt.s32.totalorder %s2459_s5, %s3272_s3 }
  0x37   : > { %v2155_v41 = vld [vmem:[#allocation10 + $0x8] sm:$0xff]  ;;  %v2157_v47 = vld [vmem:[#allocation10 + $0x18] sm:$0xff]  ;;  %v2156_v49 = vld [vmem:[#allocation10 + $0x10] sm:$0xff]  ;;  %p2466_p12 = scmp.lt.s32.totalorder %s2464_s18, %s2460_s6 }
  0x38   : > { %468 = vmatpush.bf16.xpose.msra.mxu0 %v462_v7  ;;  %946 = vrot.lane.b32.xlu2 %v2148_v15, %s2537_s1  ;;  %v2137_v19 = vld [vmem:[#allocation10 + $0x18] sm:$0xff]  ;;  %p2462_p4 = pnand %p2461_p1, %p2644_p3 }
  0x39   : > { %p2467_p13 = por %p2466_p12, %p2465_p10 }
  0x3a   : > { %p2463_p8 = pneg %p2462_p4 }
  0x3c   : > { %p2468_p0 = pnand %p2467_p13, %p2463_p8 }
  0x3e   : > { %944 = vrot.lane.b32.xlu0 %v2147_v9, %s2537_s1  ;;  %942 = vrot.lane.b32.xlu1 %v2146_v12, %s2537_s1  ;;  %v2538_v9 = vmov -inf  }
  0x3f   : > { %290 = vst.msk [vmem:[#allocation2] sm:$0xff] %vm289_vm1, %v2538_v9 }
  0x40   : > { %469 = vmatpush.bf16.xpose.msra.mxu0 %v459_v10  ;;  %894 = vrot.lane.b32.xlu2 %v2142_v23, %s2537_s1  ;;  %291 = vst.msk [vmem:[#allocation2 + $0x8] sm:$0xff] %vm289_vm1, %v2538_v9 }
  0x41   : > { %292 = vst.msk [vmem:[#allocation2 + $0x10] sm:$0xff] %vm289_vm1, %v2538_v9 }
  0x42   : > { %293 = vst.msk [vmem:[#allocation2 + $0x18] sm:$0xff] %vm289_vm1, %v2538_v9 }
  0x43   : > { %294 = vst.msk [vmem:[#allocation2 + $0x20] sm:$0xff] %vm289_vm1, %v2538_v9 }
  0x44   : > { %295 = vst.msk [vmem:[#allocation2 + $0x28] sm:$0xff] %vm289_vm1, %v2538_v9 }
  0x45   : > { %296 = vst.msk [vmem:[#allocation2 + $0x30] sm:$0xff] %vm289_vm1, %v2538_v9 }
  0x46   : > { %896 = vrot.lane.b32.xlu1 %v2143_v18, %s2537_s1  ;;  %1313 = vrot.lane.b32.xlu0 %v2160_v29, %s2537_s1  ;;  %297 = vst.msk [vmem:[#allocation2 + $0x38] sm:$0xff] %vm289_vm1, %v2538_v9  ;;  %v504_v23 = vld [vmem:[#allocation2] sm:$0xff] }
  0x47   : > { %298 = vst.msk [vmem:[#allocation2 + $0x40] sm:$0xff] %vm289_vm1, %v2538_v9 }
  0x48   : > { %470 = vmatpush.bf16.xpose.msra.mxu0 %v456_v14  ;;  %898 = vrot.lane.b32.xlu2 %v2144_v28, %s2537_s1  ;;  %299 = vst.msk [vmem:[#allocation2 + $0x48] sm:$0xff] %vm289_vm1, %v2538_v9 }
  0x49   : > { %300 = vst.msk [vmem:[#allocation2 + $0x50] sm:$0xff] %vm289_vm1, %v2538_v9 }
  0x4a   : > { %301 = vst.msk [vmem:[#allocation2 + $0x58] sm:$0xff] %vm289_vm1, %v2538_v9 }
  0x4b   : > { %302 = vst.msk [vmem:[#allocation2 + $0x60] sm:$0xff] %vm289_vm1, %v2538_v9 }
  0x4c   : > { %303 = vst.msk [vmem:[#allocation2 + $0x68] sm:$0xff] %vm289_vm1, %v2538_v9 }
  0x4d   : > { %304 = vst.msk [vmem:[#allocation2 + $0x70] sm:$0xff] %vm289_vm1, %v2538_v9 }
  0x4e   : > { %1301 = vrot.lane.b32.xlu0 %v2154_v34, %s2537_s1  ;;  %1303 = vrot.lane.b32.xlu1 %v2155_v41, %s2537_s1  ;;  %305 = vst.msk [vmem:[#allocation2 + $0x78] sm:$0xff] %vm289_vm1, %v2538_v9  ;;  %v507_v41 = vld [vmem:[#allocation2 + $0x18] sm:$0xff] }
  0x50   : > { %471 = vmatpush.bf16.xpose.msra.mxu0 %v453_v17  ;;  %900 = vrot.lane.b32.xlu2 %v2145_v30, %s2537_s1  ;;  %v2802_v30 = vld [vmem:[#allocation2 + $0x8] sm:$0xff] }
  0x58   : > { %472 = vmatpush.bf16.xpose.msra.mxu0 %v450_v20  ;;  %1315 = vrot.lane.b32.xlu2 %v2161_v35, %s2537_s1 }
  0x60   : > { %473 = vmatpush.bf16.xpose.msra.mxu0 %v447_v22  ;;  %1311 = vrot.lane.b32.xlu2 %v2159_v39, %s2537_s1  ;;  %v2540_v22 = vmov 0.0  }
  0x61   : > { %322 = vst [vmem:[#allocation4] sm:$0xff] %v2540_v22 }
  0x62   : > { %306 = vst.msk [vmem:[#allocation3] sm:$0xff] %vm289_vm1, %v2540_v22 }
  0x63   : > { %307 = vst.msk [vmem:[#allocation3 + $0x8] sm:$0xff] %vm289_vm1, %v2540_v22 }
  0x64   : > { %308 = vst.msk [vmem:[#allocation3 + $0x10] sm:$0xff] %vm289_vm1, %v2540_v22 }
  0x65   : > { %309 = vst.msk [vmem:[#allocation3 + $0x18] sm:$0xff] %vm289_vm1, %v2540_v22 }
  0x66   : > { %310 = vst.msk [vmem:[#allocation3 + $0x20] sm:$0xff] %vm289_vm1, %v2540_v22 }
  0x67   : > { %311 = vst.msk [vmem:[#allocation3 + $0x28] sm:$0xff] %vm289_vm1, %v2540_v22 }
  0x68   : > { %474 = vmatpush.bf16.xpose.msra.mxu0 %v444_v25  ;;  %1309 = vrot.lane.b32.xlu2 %v2158_v42, %s2537_s1  ;;  %312 = vst.msk [vmem:[#allocation3 + $0x30] sm:$0xff] %vm289_vm1, %v2540_v22 }
  0x69   : > { %313 = vst.msk [vmem:[#allocation3 + $0x38] sm:$0xff] %vm289_vm1, %v2540_v22 }
  0x6a   : > { %314 = vst.msk [vmem:[#allocation3 + $0x40] sm:$0xff] %vm289_vm1, %v2540_v22 }
  0x6b   : > { %315 = vst.msk [vmem:[#allocation3 + $0x48] sm:$0xff] %vm289_vm1, %v2540_v22 }
  0x6c   : > { %316 = vst.msk [vmem:[#allocation3 + $0x50] sm:$0xff] %vm289_vm1, %v2540_v22 }
  0x6d   : > { %317 = vst.msk [vmem:[#allocation3 + $0x58] sm:$0xff] %vm289_vm1, %v2540_v22 }
  0x6e   : > { %318 = vst.msk [vmem:[#allocation3 + $0x60] sm:$0xff] %vm289_vm1, %v2540_v22 }
  0x6f   : > { %1997 = vmatmul.msk.bf16.vlgmr.msra.gmra.mxu0 %vm430_vm0, %v2122_v26  ;;  %319 = vst.msk [vmem:[#allocation3 + $0x68] sm:$0xff] %vm289_vm1, %v2540_v22 }
  0x70   : > { %1307 = vrot.lane.b32.xlu2 %v2157_v47, %s2537_s1  ;;  %320 = vst.msk [vmem:[#allocation3 + $0x70] sm:$0xff] %vm289_vm1, %v2540_v22  ;;  %v509_v47 = vld [vmem:[#allocation2 + $0x28] sm:$0xff] }
  0x71   : > { %321 = vst.msk [vmem:[#allocation3 + $0x78] sm:$0xff] %vm289_vm1, %v2540_v22 }
  0x72   : > { %323 = vst [vmem:[#allocation4 + $0x8] sm:$0xff] %v2540_v22 }
  0x73   : > { %324 = vst [vmem:[#allocation4 + $0x10] sm:$0xff] %v2540_v22 }
  0x74   : > { %325 = vst [vmem:[#allocation4 + $0x18] sm:$0xff] %v2540_v22 }
  0x75   : > { %326 = vst [vmem:[#allocation4 + $0x20] sm:$0xff] %v2540_v22 }
  0x76   : > { %327 = vst [vmem:[#allocation4 + $0x28] sm:$0xff] %v2540_v22 }
  0x77   : > { %328 = vst [vmem:[#allocation4 + $0x30] sm:$0xff] %v2540_v22 }
  0x78   : > { %1305 = vrot.lane.b32.xlu2 %v2156_v49, %s2537_s1  ;;  %329 = vst [vmem:[#allocation4 + $0x38] sm:$0xff] %v2540_v22  ;;  %v2136_v22 = vld [vmem:[#allocation10 + $0x10] sm:$0xff] }
  0x7f   : > { %1998 = vmatmul.msk.bf16.gmra.mxu0 %vm430_vm0, %v2123_v27 }
  0x8a   : > { %v949_v46 = vpop.permute.xlu2 %948 }
  0x8b   : > { %v980_v48 = vsel %vm430_vm0, %v949_v46, 0 }
  0x8f   : > { %1999 = vmatmul.msk.bf16.gmra.mxu0 %vm430_vm0, %v2124_v33 }
  0x92   : > { %v947_v50 = vpop.permute.xlu2 %946 }
  0x93   : > { %v977_v51 = vsel %vm430_vm0, %v947_v50, 0  ;;  %v2816_v50 = vld [vmem:[#allocation2 + $0x20] sm:$0xff] }
  0x9a   : > { %v895_v56 = vpop.permute.xlu2 %894 }
  0x9f   : > { %2000 = vmatmul.msk.bf16.gmra.mxu0 %vm430_vm0, %v2125_v43 }
  0xa0   : > { %v957_v31 = vpop.permute.xlu0 %956  ;;  %v953_v38 = vpop.permute.xlu1 %952 }
  0xa1   : > { %v992_v32 = vsel %vm430_vm0, %v957_v31, 0  ;;  %v986_v40 = vsel %vm430_vm0, %v953_v38, 0 }
  0xa2   : > { %994 = vmatpush.bf16.xpose.msra.mxu2 %v992_v32  ;;  %v899_v60 = vpop.permute.xlu2 %898 }
  0xa8   : > { %v955_v36 = vpop.permute.xlu0 %954  ;;  %v951_v44 = vpop.permute.xlu1 %950 }
  0xa9   : > { %v989_v37 = vsel %vm430_vm0, %v955_v36, 0  ;;  %v983_v45 = vsel %vm430_vm0, %v951_v44, 0 }
  0xaa   : > { %995 = vmatpush.bf16.xpose.msra.mxu2 %v989_v37  ;;  %v901_v63 = vpop.permute.xlu2 %900  ;;  %v506_v37 = vld [vmem:[#allocation2 + $0x10] sm:$0xff] }
  0xb0   : > { %v945_v52 = vpop.permute.xlu0 %944  ;;  %v943_v54 = vpop.permute.xlu1 %942 }
  0xb1   : > { %v974_v53 = vsel %vm430_vm0, %v945_v52, 0  ;;  %v971_v55 = vsel %vm430_vm0, %v943_v54, 0 }
  0xb2   : > { %996 = vmatpush.bf16.xpose.msra.mxu2 %v986_v40  ;;  %v1316_v2 = vpop.permute.xlu2 %1315 }
  0xb3   : > { %1325 = vmatpush.bf16.msra.mxu3 %v1316_v2 }
  0xb8   : > { %v897_v59 = vpop.permute.xlu1 %896  ;;  %v1314_v3 = vpop.permute.xlu0 %1313 }
  0xb9   : > { %1326 = vmatpush.bf16.msra.mxu3 %v1314_v3  ;;  %v511_v3 = vld [vmem:[#allocation2 + $0x38] sm:$0xff] }
  0xba   : > { %997 = vmatpush.bf16.xpose.msra.mxu2 %v983_v45  ;;  %v1312_v6 = vpop.permute.xlu2 %1311 }
  0xbd   : > { %1327 = vmatpush.bf16.msra.mxu3 %v1312_v6  ;;  %v2140_v6 = vld [vmem:[#allocation10 + $0x30] sm:$0xff] }
  0xc0   : > { %v1304_v20 = vpop.permute.xlu1 %1303  ;;  %v1302_v21 = vpop.permute.xlu0 %1301 }
  0xc2   : > { %998 = vmatpush.bf16.xpose.msra.mxu2 %v980_v48  ;;  %v1310_v7 = vpop.permute.xlu2 %1309 }
  0xc3   : > { %1328 = vmatpush.bf16.msra.mxu3 %v1310_v7 }
  0xca   : > { %999 = vmatpush.bf16.xpose.msra.mxu2 %v977_v51  ;;  %v1308_v8 = vpop.permute.xlu2 %1307 }
  0xcb   : > { %1329 = vmatpush.bf16.msra.mxu3 %v1308_v8 }
  0xd2   : > { %1000 = vmatpush.bf16.xpose.msra.mxu2 %v974_v53  ;;  %v1306_v10 = vpop.permute.xlu2 %1305 }
  0xd3   : > { %1330 = vmatpush.bf16.msra.mxu3 %v1306_v10  ;;  %v2139_v10 = vld [vmem:[#allocation10 + $0x28] sm:$0xff] }
  0xd7   : > { %1331 = vmatpush.bf16.msra.mxu3 %v1304_v20 }
  0xda   : > { %1001 = vmatpush.bf16.xpose.msra.mxu2 %v971_v55 }
  0xdb   : > { %1332 = vmatpush.bf16.msra.mxu3 %v1302_v21 }
  0xe1   : > { %2081 = vmatmul.msk.bf16.vlgmr.msra.gmra.mxu2 %vm430_vm0, %v895_v56 }
  0xec   : > { %v476_v57 = vpop.f32.mrf.mxu0 }
  0xed   : > { %v2740_v58 = vmul.f32 0.125, %v476_v57  ;;  %v2832_v57 = vld [vmem:[#allocation2 + $0x30] sm:$0xff] }
  0xef   : > { %512 = vmax.xlane.f32.xlu0 %v2740_v58 }
  0xf1   : > { %2082 = vmatmul.msk.bf16.gmra.mxu2 %vm430_vm0, %v897_v59 }
  0xf4   : > { %v478_v61 = vpop.f32.mrf.mxu0 }
  0xf5   : > { %v2744_v62 = vmul.f32 0.125, %v478_v61 }
  0xf7   : > { %514 = vmax.xlane.f32.xlu1 %v2744_v62 }
  0xfc   : > { %v481_v0 = vpop.f32.mrf.mxu0 }
  0xfd   : > { %v2747_v1 = vmul.f32 0.125, %v481_v0 }
  0xff   : > { %516 = vmax.xlane.f32.xlu2 %v2747_v1 }
 0x101   : > { %2083 = vmatmul.msk.bf16.gmra.mxu2 %vm430_vm0, %v899_v60 }
 0x104   : > { %v483_v4 = vpop.f32.mrf.mxu0 }
 0x105   : > { %v2751_v5 = vmul.f32 0.125, %v483_v4 }
 0x107   : > { %518 = vmax.xlane.f32.xlu0 %v2751_v5 }
 0x10c   : > { %v486_v11 = vpop.f32.mrf.mxu0 }
 0x10d   : > { %v2759_v12 = vmul.f32 0.125, %v486_v11  ;;  %v2138_v11 = vld [vmem:[#allocation10 + $0x20] sm:$0xff] }
 0x10f   : > { %520 = vmax.xlane.f32.xlu0 %v2759_v12 }
 0x111   : > { %2084 = vmatmul.msk.bf16.gmra.mxu2 %vm430_vm0, %v901_v63  ;;  %v2141_v63 = vld [vmem:[#allocation10 + $0x38] sm:$0xff] }
 0x112   : > { %781 = vmatpush.bf16.msra.mxu1 %v2141_v63 }
 0x114   : > { %v488_v13 = vpop.f32.mrf.mxu0 }
 0x115   : > { %v2770_v14 = vmul.f32 0.125, %v488_v13 }
 0x116   : > { %782 = vmatpush.bf16.msra.mxu1 %v2140_v6 }
 0x117   : > { %522 = vmax.xlane.f32.xlu1 %v2770_v14 }
 0x11a   : > { %783 = vmatpush.bf16.msra.mxu1 %v2139_v10 }
 0x11c   : > { %v491_v15 = vpop.f32.mrf.mxu0 }
 0x11d   : > { %v2777_v16 = vmul.f32 0.125, %v491_v15 }
 0x11e   : > { %784 = vmatpush.bf16.msra.mxu1 %v2138_v11 }
 0x11f   : > { %524 = vmax.xlane.f32.xlu2 %v2777_v16 }
 0x122   : > { %785 = vmatpush.bf16.msra.mxu1 %v2137_v19  ;;  %v2890_v19 = vld [vmem:[#allocation2 + $0x50] sm:$0xff] }
 0x124   : > { %v493_v17 = vpop.f32.mrf.mxu0 }
 0x125   : > { %v2780_v18 = vmul.f32 0.125, %v493_v17 }
 0x126   : > { %786 = vmatpush.bf16.msra.mxu1 %v2136_v22 }
 0x127   : > { %526 = vmax.xlane.f32.xlu0 %v2780_v18 }
 0x162   : > { %v513_v24 = vpop.xlane.xlu0 %512 }
 0x163   : > { %v528_v25 = vmax.f32 %v504_v23, %v513_v24  ;;  %v2134_v24 = vld [vmem:[#allocation10] sm:$0xff] }
 0x164   : > { %v1003_v27 = vpop.f32.mrf.mxu2 }
 0x165   : > { %v536_v26 = vsub.f32 %v504_v23, %v528_v25  ;;  %826 = vst.msk [vmem:[#allocation2] sm:$0xff] %vm289_vm1, %v528_v25  ;;  %562 = vperm.xlu1 %2255, %v528_v25   ;;  %v2797_v28 = vmul.f32 0.125, %v1003_v27  ;;  %v2135_v23 = vld [vmem:[#allocation10 + $0x8] sm:$0xff] }
 0x166   : > { %787 = vmatpush.bf16.msra.mxu1 %v2135_v23 }
 0x167   : > { %v544_v29 = vmul.f32 1.442695, %v536_v26  ;;  %1040 = vmax.xlane.f32.xlu2 %v2797_v28 }
 0x169   : > { %2258 = vpow2.f32 %v544_v29  ;;  %v1032_v29 = vld [vmem:[#allocation2 + $0x40] sm:$0xff] }
 0x16a   : > { %v515_v31 = vpop.xlane.xlu1 %514  ;;  %788 = vmatpush.bf16.msra.mxu1 %v2134_v24 }
 0x16b   : > { %v529_v32 = vmax.f32 %v2802_v30, %v515_v31 }
 0x16c   : > { %v1005_v33 = vpop.f32.mrf.mxu2 }
 0x16d   : > { %v537_v34 = vsub.f32 %v2802_v30, %v529_v32  ;;  %827 = vst.msk [vmem:[#allocation2 + $0x8] sm:$0xff] %vm289_vm1, %v529_v32  ;;  %v2808_v35 = vmul.f32 0.125, %v1005_v33 }
 0x16f   : > { %v2810_v36 = vpop.eup %2258  ;;  %1042 = vmax.xlane.f32.xlu0 %v2808_v35  ;;  %v546_v8 = vmul.f32 1.442695, %v537_v34 }
 0x170   : > { %683 = vperm.xlu1 %2255, %v2810_v36  }
 0x172   : > { %v517_v38 = vpop.xlane.xlu2 %516 }
 0x173   : > { %v530_v39 = vmax.f32 %v506_v37, %v517_v38 }
 0x174   : > { %v1008_v44 = vpop.f32.mrf.mxu2 }
 0x175   : > { %v538_v40 = vsub.f32 %v506_v37, %v530_v39  ;;  %828 = vst.msk [vmem:[#allocation2 + $0x10] sm:$0xff] %vm289_vm1, %v530_v39  ;;  %v2828_v55 = vmul.f32 0.125, %v1008_v44 }
 0x177   : > { %v548_v9 = vmul.f32 1.442695, %v538_v40 }
 0x17a   : > { %v519_v42 = vpop.xlane.xlu0 %518 }
 0x17b   : > { %v531_v43 = vmax.f32 %v507_v41, %v519_v42 }
 0x17c   : > { %v1010_v45 = vpop.f32.mrf.mxu2 }
 0x17d   : > { %829 = vst.msk [vmem:[#allocation2 + $0x18] sm:$0xff] %vm289_vm1, %v531_v43  ;;  %577 = vperm.xlu1 %2255, %v531_v43   ;;  %v2837_v60 = vmul.f32 0.125, %v1010_v45  ;;  %v539_v0 = vsub.f32 %v507_v41, %v531_v43 }
 0x17f   : > { %567 = vperm.xlu2 %2256, %v529_v32   ;;  %v550_v7 = vmul.f32 1.442695, %v539_v0 }
 0x181   : > { %2260 = vpow2.f32 %v550_v7 }
 0x182   : > { %v521_v49 = vpop.xlane.xlu0 %520  ;;  %2262 = vpow2.f32 %v546_v8 }
 0x183   : > { %572 = vperm.xlu0 %2257, %v530_v39   ;;  %v2819_v51 = vmax.f32 %v2816_v50, %v521_v49  ;;  %2264 = vpow2.f32 %v548_v9  ;;  %v1033_v39 = vld [vmem:[#allocation2 + $0x48] sm:$0xff] }
 0x184   : > { %v1013_v52 = vpop.f32.mrf.mxu2 }
 0x185   : > { %v2822_v53 = vmul.f32 0.125, %v1013_v52  ;;  %v540_v54 = vsub.f32 %v2816_v50, %v2819_v51  ;;  %830 = vst.msk [vmem:[#allocation2 + $0x20] sm:$0xff] %vm289_vm1, %v2819_v51 }
 0x187   : > { %v2845_v13 = vpop.eup %2260 }
 0x188   : > { %v2847_v17 = vpop.eup %2262 }
 0x189   : > { %v2850_v20 = vpop.eup %2264 }
 0x18a   : > { %v523_v46 = vpop.xlane.xlu1 %522 }
 0x18b   : > { %v533_v48 = vmax.f32 %v509_v47, %v523_v46 }
 0x18c   : > { %v1015_v37 = vpop.f32.mrf.mxu2 }
 0x18d   : > { %831 = vst.msk [vmem:[#allocation2 + $0x28] sm:$0xff] %vm289_vm1, %v533_v48  ;;  %v541_v15 = vsub.f32 %v509_v47, %v533_v48 }
 0x18f   : > { %v554_v21 = vmul.f32 1.442695, %v541_v15 }
 0x191   : > { %2266 = vpow2.f32 %v554_v21 }
 0x192   : > { %v525_v56 = vpop.xlane.xlu2 %524 }
 0x193   : > { %v2835_v59 = vmax.f32 %v2832_v57, %v525_v56 }
 0x195   : > { %v542_v61 = vsub.f32 %v2832_v57, %v2835_v59  ;;  %832 = vst.msk [vmem:[#allocation2 + $0x30] sm:$0xff] %vm289_vm1, %v2835_v59 }
 0x197   : > { %v2855_v25 = vpop.eup %2266 }
 0x19a   : > { %v527_v2 = vpop.xlane.xlu0 %526 }
 0x19b   : > { %v535_v4 = vmax.f32 %v511_v3, %v527_v2 }
 0x19d   : > { %833 = vst.msk [vmem:[#allocation2 + $0x38] sm:$0xff] %vm289_vm1, %v535_v4  ;;  %v543_v26 = vsub.f32 %v511_v3, %v535_v4  ;;  %v552_v3 = vmul.f32 1.442695, %v540_v54 }
 0x19f   : > { %v558_v27 = vmul.f32 1.442695, %v543_v26  ;;  %v2905_v26 = vld [vmem:[#allocation2 + $0x58] sm:$0xff] }
 0x1a1   : > { %2268 = vpow2.f32 %v558_v27 }
 0x1a7   : > { %1048 = vmax.xlane.f32.xlu1 %v2822_v53  ;;  %v2859_v33 = vpop.eup %2268 }
 0x1a8   : > { %1044 = vmax.xlane.f32.xlu2 %v2828_v55 }
 0x1ad   : > { %1046 = vmax.xlane.f32.xlu0 %v2837_v60 }
 0x1c0   : > { %698 = vperm.xlu1 %2255, %v2845_v13   ;;  %688 = vperm.xlu2 %2256, %v2847_v17  }
 0x1c1   : > { %693 = vperm.xlu0 %2257, %v2850_v20  }
 0x1c8   : > { %587 = vperm.xlu1 %2255, %v533_v48   ;;  %582 = vperm.xlu2 %2256, %v2819_v51   ;;  %v1018_v48 = vpop.f32.mrf.mxu2 }
 0x1d0   : > { %708 = vperm.xlu1 %2255, %v2855_v25   ;;  %592 = vperm.xlu2 %2256, %v2835_v59   ;;  %v1020_v2 = vpop.f32.mrf.mxu2 }
 0x1d1   : > { %v2882_v8 = vmul.f32 0.125, %v1020_v2 }
 0x1d7   : > { %v563_v31 = vpop.permute.xlu1 %562 }
 0x1d8   : > { %597 = vperm.xlu1 %2255, %v535_v4   ;;  %v600_v34 = vsub.f32 %v2740_v58, %v563_v31  ;;  %v2868_v58 = vmul.f32 0.125, %v1015_v37 }
 0x1da   : > { %v1041_v30 = vpop.xlane.xlu2 %1040  ;;  %v608_v40 = vmul.f32 1.442695, %v600_v34 }
 0x1db   : > { %v1056_v32 = vmax.f32 %v1032_v29, %v1041_v30 }
 0x1dc   : > { %2270 = vpow2.f32 %v608_v40 }
 0x1dd   : > { %1403 = vst.msk [vmem:[#allocation2 + $0x40] sm:$0xff] %vm289_vm1, %v1056_v32  ;;  %v1064_v38 = vsub.f32 %v1032_v29, %v1056_v32 }
 0x1df   : > { %v1072_v45 = vmul.f32 1.442695, %v1064_v38  ;;  %v556_v38 = vmul.f32 1.442695, %v542_v61 }
 0x1e0   : > { %718 = vperm.xlu1 %2255, %v2859_v33  }
 0x1e2   : > { %v1043_v41 = vpop.xlane.xlu0 %1042  ;;  %v568_v42 = vpop.permute.xlu2 %567 }
 0x1e3   : > { %v1057_v43 = vmax.f32 %v1033_v39, %v1043_v41  ;;  %v601_v44 = vsub.f32 %v2744_v62, %v568_v42  ;;  %v2865_v46 = vpop.permute.xlu1 %683  ;;  %v2271_v49 = vpop.eup %2270 }
 0x1e5   : > { %1404 = vst.msk [vmem:[#allocation2 + $0x48] sm:$0xff] %vm289_vm1, %v1057_v43  ;;  %v610_v47 = vmul.f32 1.442695, %v601_v44  ;;  %v1065_v51 = vsub.f32 %v1033_v39, %v1057_v43 }
 0x1e7   : > { %2272 = vpow2.f32 %v610_v47  ;;  %v1074_v54 = vmul.f32 1.442695, %v1065_v51  ;;  %v721_v51 = vmul.f32 0.0, %v2865_v46 }
 0x1e8   : > { %1090 = vperm.xlu1 %2255, %v1056_v32   ;;  %2274 = vpow2.f32 %v1072_v45  ;;  %v2917_v32 = vmul.f32 0.125, %v1018_v48 }
 0x1e9   : > { %2276 = vpow2.f32 %v552_v3 }
 0x1eb   : > { %1050 = vmax.xlane.f32.xlu0 %v2868_v58 }
 0x1ed   : > { %v2871_v52 = vpop.eup %2272 }
 0x1ee   : > { %v2873_v56 = vpop.eup %2274  ;;  %v729_v63 = vpack.c.bf16 %v2871_v52, %v2271_v49 }
 0x1ef   : > { %v578_v62 = vpop.permute.xlu1 %577  ;;  %v2885_v10 = vpop.eup %2276 }
 0x1f0   : > { %1211 = vperm.xlu1 %2255, %v2873_v56   ;;  %789 = vmatmul.bf16.vlgmr.msra.gmra.mxu1 %v729_v63  ;;  %v603_v0 = vsub.f32 %v2751_v5, %v578_v62 }
 0x1f2   : > { %v614_v4 = vmul.f32 1.442695, %v603_v0 }
 0x1f4   : > { %2278 = vpow2.f32 %v614_v4  ;;  %v1037_v4 = vld [vmem:[#allocation2 + $0x68] sm:$0xff] }
 0x1f5   : > { %v573_v6 = vpop.permute.xlu0 %572 }
 0x1f6   : > { %v602_v7 = vsub.f32 %v2747_v1, %v573_v6  ;;  %v2888_v1 = vld [vmem:[#allocation2 + $0x60] sm:$0xff] }
 0x1f8   : > { %v612_v9 = vmul.f32 1.442695, %v602_v7 }
 0x1f9   : > { %1054 = vmax.xlane.f32.xlu2 %v2882_v8 }
 0x1fa   : > { %2280 = vpow2.f32 %v612_v9  ;;  %v2279_v5 = vpop.eup %2278 }
 0x1fb   : > { %2282 = vpow2.f32 %v1074_v54 }
 0x1fc   : > { %2284 = vpow2.f32 %v556_v38 }
 0x1ff   : > { %703 = vperm.xlu0 %2257, %v2885_v10  }
 0x200   : > { %v2281_v11 = vpop.eup %2280 }
 0x201   : > { %640 = vadd.xlane.f32.xlu2 %v2271_v49  ;;  %v730_v50 = vpack.c.bf16 %v2279_v5, %v2281_v11  ;;  %v2907_v27 = vpop.eup %2282 }
 0x202   : > { %v2929_v44 = vpop.eup %2284 }
 0x203   : > { %794 = vmatmul.bf16.gmra.mxu1 %v730_v50 }
 0x219   : > { %1095 = vperm.xlu2 %2256, %v1057_v43  }
 0x21a   : > { %v1049_v15 = vpop.xlane.xlu1 %1048 }
 0x21b   : > { %v2893_v21 = vmax.f32 %v2888_v1, %v1049_v15  ;;  %v1045_v22 = vpop.xlane.xlu2 %1044 }
 0x21c   : > { %v2898_v23 = vmax.f32 %v2890_v19, %v1045_v22 }
 0x21d   : > { %1407 = vst.msk [vmem:[#allocation2 + $0x60] sm:$0xff] %vm289_vm1, %v2893_v21 }
 0x21e   : > { %v1066_v24 = vsub.f32 %v2890_v19, %v2898_v23  ;;  %1405 = vst.msk [vmem:[#allocation2 + $0x50] sm:$0xff] %vm289_vm1, %v2898_v23  ;;  %1100 = vperm.xlu1 %2255, %v2898_v23  }
 0x220   : > { %v1047_v29 = vpop.xlane.xlu0 %1046 }
 0x221   : > { %v2910_v30 = vmax.f32 %v2905_v26, %v1047_v29  ;;  %1216 = vperm.xlu2 %2256, %v2907_v27  }
 0x223   : > { %v1067_v31 = vsub.f32 %v2905_v26, %v2910_v30  ;;  %1406 = vst.msk [vmem:[#allocation2 + $0x58] sm:$0xff] %vm289_vm1, %v2910_v30  ;;  %v2919_v34 = vpop.permute.xlu2 %688 }
 0x229   : > { %1052 = vmax.xlane.f32.xlu0 %v2917_v32 }
 0x22b   : > { %v583_v39 = vpop.permute.xlu2 %582 }
 0x22c   : > { %v604_v40 = vsub.f32 %v2759_v12, %v583_v39  ;;  %v624_v39 = vld [vmem:[#allocation3] sm:$0xff] }
 0x22d   : > { %v632_v46 = vmul.f32 %v2810_v36, %v624_v39 }
 0x22e   : > { %v616_v41 = vmul.f32 1.442695, %v604_v40 }
 0x230   : > { %2286 = vpow2.f32 %v616_v41  ;;  %v722_v41 = vmul.f32 0.0, %v2919_v34 }
 0x232   : > { %v2922_v37 = vpop.permute.xlu1 %698 }
 0x233   : > { %v593_v47 = vpop.permute.xlu2 %592  ;;  %v694_v3 = vpop.permute.xlu0 %693 }
 0x234   : > { %v606_v59 = vsub.f32 %v2777_v16, %v593_v47 }
 0x236   : > { %v2934_v57 = vpop.eup %2286 }
 0x23a   : > { %v588_v42 = vpop.permute.xlu1 %587 }
 0x23b   : > { %v605_v43 = vsub.f32 %v2770_v14, %v588_v42  ;;  %v620_v14 = vmul.f32 1.442695, %v606_v59 }
 0x23d   : > { %v618_v45 = vmul.f32 1.442695, %v605_v43  ;;  %713 = vperm.xlu0 %2257, %v2929_v44  }
 0x23f   : > { %2288 = vpow2.f32 %v618_v45 }
 0x240   : > { %2290 = vpow2.f32 %v620_v14  ;;  %v723_v14 = vmul.f32 0.0, %v694_v3 }
 0x242   : > { %v2932_v48 = vpop.permute.xlu1 %708 }
 0x245   : > { %v2937_v12 = vpop.eup %2288 }
 0x246   : > { %v731_v61 = vpack.c.bf16 %v2937_v12, %v2934_v57  ;;  %v2291_v0 = vpop.eup %2290 }
 0x248   : > { %799 = vmatmul.bf16.gmra.mxu1 %v731_v61  ;;  %644 = vadd.xlane.f32.xlu1 %v2281_v11 }
 0x24a   : > { %v598_v49 = vpop.permute.xlu1 %597  ;;  %646 = vadd.xlane.f32.xlu2 %v2279_v5  ;;  %v1039_v5 = vld [vmem:[#allocation2 + $0x78] sm:$0xff] }
 0x24b   : > { %v607_v62 = vsub.f32 %v2780_v18, %v598_v49 }
 0x24d   : > { %v622_v63 = vmul.f32 1.442695, %v607_v62 }
 0x24f   : > { %2292 = vpow2.f32 %v622_v63 }
 0x252   : > { %652 = vadd.xlane.f32.xlu2 %v2291_v0  ;;  %v2950_v50 = vpop.permute.xlu1 %718 }
 0x255   : > { %v2942_v2 = vpop.eup %2292 }
 0x256   : > { %v732_v16 = vpack.c.bf16 %v2942_v2, %v2291_v0 }
 0x258   : > { %804 = vmatmul.bf16.gmra.mxu1 %v732_v16 }
 0x25a   : > { %v1091_v43 = vpop.permute.xlu1 %1090 }
 0x25b   : > { %v1128_v19 = vsub.f32 %v2797_v28, %v1091_v43  ;;  %v1078_v28 = vmul.f32 1.442695, %v1067_v31  ;;  %v1038_v31 = vld [vmem:[#allocation2 + $0x70] sm:$0xff] }
 0x25d   : > { %v1136_v36 = vmul.f32 1.442695, %v1128_v19 }
 0x25e   : > { %v1051_v6 = vpop.xlane.xlu0 %1050 }
 0x25f   : > { %v1061_v7 = vmax.f32 %v1037_v4, %v1051_v6 }
 0x261   : > { %v1069_v9 = vsub.f32 %v1037_v4, %v1061_v7  ;;  %1408 = vst.msk [vmem:[#allocation2 + $0x68] sm:$0xff] %vm289_vm1, %v1061_v7  ;;  %1105 = vperm.xlu1 %2255, %v2910_v30  }
 0x263   : > { %v1082_v18 = vmul.f32 1.442695, %v1069_v9 }
 0x265   : > { %2294 = vpow2.f32 %v1082_v18 }
 0x267   : > { %642 = vadd.xlane.f32.xlu0 %v2871_v52  ;;  %v1076_v52 = vmul.f32 1.442695, %v1066_v24 }
 0x269   : > { %1115 = vperm.xlu1 %2255, %v1061_v7  }
 0x26b   : > { %v2948_v11 = vpop.eup %2294 }
 0x26c   : > { %v1055_v54 = vpop.xlane.xlu2 %1054  ;;  %1236 = vperm.xlu2 %2256, %v2948_v11  }
 0x26d   : > { %v1063_v15 = vmax.f32 %v1039_v5, %v1055_v54  ;;  %v790_v22 = vpop.f32.mrf.mxu1 }
 0x26e   : > { %v810_v29 = vadd.f32 %v790_v22, %v721_v51  ;;  %v626_v22 = vld [vmem:[#allocation3 + $0x10] sm:$0xff] }
 0x26f   : > { %v1071_v38 = vsub.f32 %v1039_v5, %v1063_v15  ;;  %1410 = vst.msk [vmem:[#allocation2 + $0x78] sm:$0xff] %vm289_vm1, %v1063_v15  ;;  %v2988_v5 = vpop.permute.xlu1 %1211 }
 0x270   : > { %818 = vst.msk [vmem:[#allocation4] sm:$0xff] %vm430_vm0, %v810_v29  ;;  %v627_v29 = vld [vmem:[#allocation3 + $0x18] sm:$0xff] }
 0x271   : > { %v1086_v40 = vmul.f32 1.442695, %v1071_v38  ;;  %v704_v30 = vpop.permute.xlu0 %703  ;;  %v634_v38 = vmul.f32 %v2850_v20, %v626_v22 }
 0x273   : > { %2296 = vpow2.f32 %v1086_v40 }
 0x274   : > { %2298 = vpow2.f32 %v1076_v52  ;;  %v641_v42 = vpop.xlane.xlu2 %640 }
 0x275   : > { %v656_v45 = vadd.f32 %v641_v42, %v632_v46  ;;  %v792_v47 = vpop.f32.mrf.mxu1  ;;  %2300 = vpow2.f32 %v1136_v36  ;;  %v630_v46 = vld [vmem:[#allocation3 + $0x30] sm:$0xff]  ;;  %v725_v42 = vmul.f32 0.0, %v704_v30 }
 0x276   : > { %v811_v59 = vadd.f32 %v792_v47, %v722_v41  ;;  %v638_v43 = vmul.f32 %v2929_v44, %v630_v46 }
 0x277   : > { %665 = vst.msk [vmem:[#allocation3] sm:$0xff] %vm289_vm1, %v656_v45 }
 0x278   : > { %819 = vst.msk [vmem:[#allocation4 + $0x8] sm:$0xff] %vm430_vm0, %v811_v59 }
 0x279   : > { %v2964_v23 = vpop.eup %2296 }
 0x27a   : > { %v2966_v24 = vpop.eup %2298  ;;  %1246 = vperm.xlu2 %2256, %v2964_v23  }
 0x27b   : > { %1221 = vperm.xlu0 %2257, %v2966_v24   ;;  %v2301_v0 = vpop.eup %2300 }
 0x27c   : > { %v1096_v34 = vpop.permute.xlu2 %1095 }
 0x27d   : > { %v1129_v61 = vsub.f32 %v2808_v35, %v1096_v34  ;;  %v724_v35 = vmul.f32 0.0, %v2922_v37  ;;  %v1068_v37 = vsub.f32 %v2888_v1, %v2893_v21 }
 0x27e   : > { %v1422_v1 = vld [vmem:[#allocation3] sm:$0xff] }
 0x27f   : > { %v1138_v49 = vmul.f32 1.442695, %v1129_v61  ;;  %v1080_v18 = vmul.f32 1.442695, %v1068_v37 }
 0x280   : > { %v795_v62 = vpop.f32.mrf.mxu1 }
 0x281   : > { %2302 = vpow2.f32 %v1138_v49  ;;  %v812_v63 = vadd.f32 %v795_v62, %v723_v14 }
 0x282   : > { %2304 = vpow2.f32 %v1078_v28 }
 0x283   : > { %820 = vst.msk [vmem:[#allocation4 + $0x10] sm:$0xff] %vm430_vm0, %v812_v63  ;;  %1110 = vperm.xlu0 %2257, %v2893_v21   ;;  %2306 = vpow2.f32 %v1080_v18 }
 0x287   : > { %v2976_v16 = vpop.eup %2302 }
 0x288   : > { %v797_v3 = vpop.f32.mrf.mxu1  ;;  %v1257_v4 = vpack.c.bf16 %v2976_v16, %v2301_v0  ;;  %v2980_v26 = vpop.eup %2304 }
 0x289   : > { %v813_v6 = vadd.f32 %v797_v3, %v724_v35  ;;  %v2990_v51 = vpop.eup %2306 }
 0x28a   : > { %1333 = vmatmul.bf16.vlgmr.msra.gmra.mxu3 %v1257_v4  ;;  %v728_v4 = vmul.f32 0.0, %v2950_v50 }
 0x28b   : > { %821 = vst.msk [vmem:[#allocation4 + $0x18] sm:$0xff] %vm430_vm0, %v813_v6  ;;  %1226 = vperm.xlu0 %2257, %v2980_v26  }
 0x290   : > { %v1101_v54 = vpop.permute.xlu1 %1100 }
 0x291   : > { %v1130_v34 = vsub.f32 %v2828_v55, %v1101_v54 }
 0x293   : > { %650 = vadd.xlane.f32.xlu1 %v2937_v12  ;;  %v2993_v12 = vpop.permute.xlu2 %1216  ;;  %v1140_v14 = vmul.f32 1.442695, %v1130_v34 }
 0x29c   : > { %v1053_v7 = vpop.xlane.xlu0 %1052 }
 0x29d   : > { %v1062_v9 = vmax.f32 %v1038_v31, %v1053_v7 }
 0x29f   : > { %1409 = vst.msk [vmem:[#allocation2 + $0x70] sm:$0xff] %vm289_vm1, %v1062_v9  ;;  %v1070_v41 = vsub.f32 %v1038_v31, %v1062_v9 }
 0x2a1   : > { %v1084_v47 = vmul.f32 1.442695, %v1070_v41 }
 0x2a3   : > { %1169 = vadd.xlane.f32.xlu2 %v2301_v0  ;;  %2308 = vpow2.f32 %v1084_v47 }
 0x2a4   : > { %2310 = vpow2.f32 %v1140_v14 }
 0x2a9   : > { %v3006_v61 = vpop.eup %2308 }
 0x2aa   : > { %v2311_v31 = vpop.eup %2310 }
 0x2ac   : > { %1125 = vperm.xlu1 %2255, %v1063_v15   ;;  %v635_v15 = vmul.f32 %v2845_v13, %v627_v29  ;;  %v726_v13 = vmul.f32 0.0, %v2932_v48  ;;  %v625_v48 = vld [vmem:[#allocation3 + $0x8] sm:$0xff] }
 0x2ad   : > { %v633_v55 = vmul.f32 %v2847_v17, %v625_v48 }
 0x2af   : > { %v714_v44 = vpop.permute.xlu0 %713 }
 0x2b0   : > { %v727_v49 = vmul.f32 0.0, %v714_v44 }
 0x2b4   : > { %1231 = vperm.xlu1 %2255, %v2990_v51  }
 0x2b5   : > { %648 = vadd.xlane.f32.xlu0 %v2934_v57 }
 0x2bb   : > { %v645_v52 = vpop.xlane.xlu1 %644 }
 0x2bc   : > { %v658_v21 = vadd.f32 %v645_v52, %v634_v38  ;;  %1432 = vperm.xlu1 %2255, %v1422_v1  }
 0x2bd   : > { %v647_v39 = vpop.xlane.xlu2 %646 }
 0x2be   : > { %667 = vst.msk [vmem:[#allocation3 + $0x10] sm:$0xff] %vm289_vm1, %v658_v21  ;;  %v659_v40 = vadd.f32 %v647_v39, %v635_v15  ;;  %v629_v39 = vld [vmem:[#allocation3 + $0x28] sm:$0xff] }
 0x2c0   : > { %668 = vst.msk [vmem:[#allocation3 + $0x18] sm:$0xff] %vm289_vm1, %v659_v40 }
 0x2c5   : > { %v800_v57 = vpop.f32.mrf.mxu1  ;;  %v653_v20 = vpop.xlane.xlu2 %652 }
 0x2c6   : > { %v814_v45 = vadd.f32 %v800_v57, %v725_v42  ;;  %v662_v59 = vadd.f32 %v653_v20, %v638_v43  ;;  %v1424_v43 = vld [vmem:[#allocation3 + $0x10] sm:$0xff]  ;;  %v628_v20 = vld [vmem:[#allocation3 + $0x20] sm:$0xff] }
 0x2c7   : > { %v1425_v52 = vld [vmem:[#allocation3 + $0x18] sm:$0xff] }
 0x2c8   : > { %822 = vst.msk [vmem:[#allocation4 + $0x20] sm:$0xff] %vm430_vm0, %v814_v45 }
 0x2c9   : > { %671 = vst.msk [vmem:[#allocation3 + $0x30] sm:$0xff] %vm289_vm1, %v662_v59  ;;  %1120 = vperm.xlu0 %2257, %v1062_v9  }
 0x2cd   : > { %v802_v19 = vpop.f32.mrf.mxu1  ;;  %v3021_v40 = vpop.permute.xlu2 %1236 }
 0x2ce   : > { %v815_v36 = vadd.f32 %v802_v19, %v726_v13 }
 0x2d0   : > { %823 = vst.msk [vmem:[#allocation4 + $0x28] sm:$0xff] %vm430_vm0, %v815_v36 }
 0x2d1   : > { %1241 = vperm.xlu0 %2257, %v3006_v61  }
 0x2d3   : > { %v1106_v28 = vpop.permute.xlu1 %1105 }
 0x2d4   : > { %v1131_v62 = vsub.f32 %v2837_v60, %v1106_v28 }
 0x2d5   : > { %v805_v63 = vpop.f32.mrf.mxu1  ;;  %v3025_v41 = vpop.permute.xlu2 %1246 }
 0x2d6   : > { %v816_v0 = vadd.f32 %v805_v63, %v727_v49  ;;  %v1142_v35 = vmul.f32 1.442695, %v1131_v62  ;;  %v1428_v49 = vld [vmem:[#allocation3 + $0x30] sm:$0xff] }
 0x2d8   : > { %824 = vst.msk [vmem:[#allocation4 + $0x30] sm:$0xff] %vm430_vm0, %v816_v0  ;;  %2312 = vpow2.f32 %v1142_v35 }
 0x2da   : > { %v643_v3 = vpop.xlane.xlu0 %642 }
 0x2db   : > { %v657_v6 = vadd.f32 %v643_v3, %v633_v55  ;;  %v1116_v17 = vpop.permute.xlu1 %1115 }
 0x2dc   : > { %v1133_v54 = vsub.f32 %v2868_v58, %v1116_v17  ;;  %v637_v58 = vmul.f32 %v2855_v25, %v629_v39  ;;  %v636_v25 = vmul.f32 %v2885_v10, %v628_v20  ;;  %v1158_v39 = vld [vmem:[#allocation3 + $0x68] sm:$0xff]  ;;  %v1157_v20 = vld [vmem:[#allocation3 + $0x60] sm:$0xff] }
 0x2dd   : > { %v807_v30 = vpop.f32.mrf.mxu1  ;;  %666 = vst.msk [vmem:[#allocation3 + $0x8] sm:$0xff] %vm289_vm1, %v657_v6 }
 0x2de   : > { %v817_v7 = vadd.f32 %v807_v30, %v728_v4  ;;  %v2313_v60 = vpop.eup %2312  ;;  %v1146_v50 = vmul.f32 1.442695, %v1133_v54  ;;  %v631_v4 = vld [vmem:[#allocation3 + $0x38] sm:$0xff] }
 0x2df   : > { %v1258_v9 = vpack.c.bf16 %v2313_v60, %v2311_v31  ;;  %v639_v6 = vmul.f32 %v2859_v33, %v631_v4 }
 0x2e0   : > { %825 = vst.msk [vmem:[#allocation4 + $0x38] sm:$0xff] %vm430_vm0, %v817_v7  ;;  %2314 = vpow2.f32 %v1146_v50  ;;  %v1154_v7 = vld [vmem:[#allocation3 + $0x48] sm:$0xff]  ;;  %v1156_v50 = vld [vmem:[#allocation3 + $0x58] sm:$0xff] }
 0x2e1   : > { %1338 = vmatmul.bf16.gmra.mxu3 %v1258_v9  ;;  %v1164_v33 = vmul.f32 %v2980_v26, %v1156_v50  ;;  %v1166_v26 = vmul.f32 %v2948_v11, %v1158_v39 }
 0x2e4   : > { %v1423_v37 = vld [vmem:[#allocation3 + $0x8] sm:$0xff] }
 0x2e5   : > { %1437 = vperm.xlu2 %2256, %v1423_v37  }
 0x2e6   : > { %1173 = vadd.xlane.f32.xlu1 %v2311_v31  ;;  %v2315_v1 = vpop.eup %2314 }
 0x2ed   : > { %v3015_v18 = vpop.permute.xlu0 %1221 }
 0x2f5   : > { %v1111_v22 = vpop.permute.xlu0 %1110 }
 0x2f6   : > { %v1132_v29 = vsub.f32 %v2822_v53, %v1111_v22 }
 0x2f8   : > { %v1144_v38 = vmul.f32 1.442695, %v1132_v29 }
 0x2fa   : > { %2316 = vpow2.f32 %v1144_v38 }
 0x2fb   : > { %654 = vadd.xlane.f32.xlu0 %v2942_v2  ;;  %v1153_v2 = vld [vmem:[#allocation3 + $0x40] sm:$0xff] }
 0x2fc   : > { %v1161_v42 = vmul.f32 %v2873_v56, %v1153_v2 }
 0x2ff   : > { %1447 = vperm.xlu1 %2255, %v1425_v52  }
 0x300   : > { %v2317_v21 = vpop.eup %2316 }
 0x301   : > { %v1259_v15 = vpack.c.bf16 %v2315_v1, %v2317_v21 }
 0x303   : > { %1171 = vadd.xlane.f32.xlu0 %v2976_v16  ;;  %1343 = vmatmul.bf16.gmra.mxu3 %v1259_v15  ;;  %v3029_v16 = vpop.permute.xlu0 %1226 }
 0x306   : > { %v651_v46 = vpop.xlane.xlu1 %650 }
 0x307   : > { %v661_v53 = vadd.f32 %v651_v46, %v637_v58 }
 0x309   : > { %670 = vst.msk [vmem:[#allocation3 + $0x28] sm:$0xff] %vm289_vm1, %v661_v53 }
 0x30d   : > { %v1334_v9 = vpop.f32.mrf.mxu3 }
 0x30e   : > { %1175 = vadd.xlane.f32.xlu2 %v2313_v60  ;;  %v1162_v60 = vmul.f32 %v2907_v27, %v1154_v7 }
 0x310   : > { %v1427_v35 = vld [vmem:[#allocation3 + $0x28] sm:$0xff] }
 0x315   : > { %v1336_v22 = vpop.f32.mrf.mxu3 }
 0x316   : > { %v1170_v57 = vpop.xlane.xlu2 %1169 }
 0x317   : > { %v1185_v45 = vadd.f32 %v1170_v57, %v1161_v42  ;;  %1442 = vperm.xlu0 %2257, %v1424_v43  }
 0x319   : > { %1193 = vst.msk [vmem:[#allocation3 + $0x40] sm:$0xff] %vm289_vm1, %v1185_v45 }
 0x31e   : > { %v1126_v19 = vpop.permute.xlu1 %1125 }
 0x31f   : > { %v1135_v56 = vsub.f32 %v2882_v8, %v1126_v19  ;;  %v1155_v8 = vld [vmem:[#allocation3 + $0x50] sm:$0xff] }
 0x320   : > { %v1163_v48 = vmul.f32 %v2966_v24, %v1155_v8  ;;  %v1159_v19 = vld [vmem:[#allocation3 + $0x70] sm:$0xff] }
 0x321   : > { %v1150_v36 = vmul.f32 1.442695, %v1135_v56  ;;  %v1167_v56 = vmul.f32 %v3006_v61, %v1159_v19 }
 0x323   : > { %2318 = vpow2.f32 %v1150_v36 }
 0x326   : > { %v3035_v62 = vpop.permute.xlu1 %1231 }
 0x328   : > { %v649_v47 = vpop.xlane.xlu0 %648 }
 0x329   : > { %v660_v59 = vadd.f32 %v649_v47, %v636_v25  ;;  %1179 = vadd.xlane.f32.xlu1 %v2315_v1  ;;  %v2319_v10 = vpop.eup %2318  ;;  %v1165_v25 = vmul.f32 %v2990_v51, %v1157_v20 }
 0x32b   : > { %669 = vst.msk [vmem:[#allocation3 + $0x20] sm:$0xff] %vm289_vm1, %v660_v59 }
 0x32e   : > { %v3037_v0 = vpop.permute.xlu1 %1432 }
 0x332   : > { %v1426_v13 = vld [vmem:[#allocation3 + $0x20] sm:$0xff] }
 0x333   : > { %1452 = vperm.xlu2 %2256, %v1426_v13  }
 0x33b   : > { %v1121_v34 = vpop.permute.xlu0 %1120 }
 0x33c   : > { %v1134_v44 = vsub.f32 %v2917_v32, %v1121_v34 }
 0x33e   : > { %v1148_v14 = vmul.f32 1.442695, %v1134_v44 }
 0x33f   : > { %v3046_v54 = vpop.permute.xlu2 %1437 }
 0x340   : > { %2320 = vpow2.f32 %v1148_v14  ;;  %vm1490_vm15 = vweird.f32 %v3046_v54 }
 0x341   : > { %1177 = vadd.xlane.f32.xlu0 %v2317_v21  ;;  %v1615_v21 = vld [vmem:[#allocation3 + $0x40] sm:$0xff] }
 0x342   : > { %1462 = vperm.xlu1 %2255, %v1428_v49  }
 0x343   : > { %v3041_v3 = vpop.permute.xlu0 %1241 }
 0x346   : > { %v2321_v28 = vpop.eup %2320 }
 0x347   : > { %v1260_v63 = vpack.c.bf16 %v2319_v10, %v2321_v28 }
 0x349   : > { %1348 = vmatmul.bf16.gmra.mxu3 %v1260_v63 }
 0x355   : > { %1457 = vperm.xlu0 %2257, %v1427_v35   ;;  %v1203_v35 = vld [vmem:[#allocation4 + $0x10] sm:$0xff] }
 0x356   : > { %v1251_v61 = vmul.f32 %v3015_v18, %v1203_v35 }
 0x359   : > { %v1174_v32 = vpop.xlane.xlu1 %1173 }
 0x35a   : > { %v1187_v55 = vadd.f32 %v1174_v32, %v1163_v48 }
 0x35c   : > { %1195 = vst.msk [vmem:[#allocation3 + $0x50] sm:$0xff] %vm289_vm1, %v1187_v55  ;;  %1181 = vadd.xlane.f32.xlu2 %v2321_v28 }
 0x363   : > { %v1617_v38 = vld [vmem:[#allocation3 + $0x50] sm:$0xff] }
 0x364   : > { %v1339_v1 = vpop.f32.mrf.mxu3 }
 0x36c   : > { %v1341_v58 = vpop.f32.mrf.mxu3 }
 0x36e   : > { %v655_v30 = vpop.xlane.xlu0 %654 }
 0x36f   : > { %v663_v31 = vadd.f32 %v655_v30, %v639_v6 }
 0x371   : > { %672 = vst.msk [vmem:[#allocation3 + $0x38] sm:$0xff] %vm289_vm1, %v663_v31  ;;  %v3053_v15 = vpop.permute.xlu1 %1447 }
 0x376   : > { %v1172_v37 = vpop.xlane.xlu0 %1171 }
 0x377   : > { %v1186_v24 = vadd.f32 %v1172_v37, %v1162_v60 }
 0x378   : > { %v1429_v17 = vld [vmem:[#allocation3 + $0x38] sm:$0xff] }
 0x379   : > { %1194 = vst.msk [vmem:[#allocation3 + $0x48] sm:$0xff] %vm289_vm1, %v1186_v24  ;;  %1467 = vperm.xlu2 %2256, %v1429_v17  }
 0x37f   : > { %1183 = vadd.xlane.f32.xlu0 %v2319_v10 }
 0x380   : > { %v1616_v29 = vld [vmem:[#allocation3 + $0x48] sm:$0xff] }
 0x381   : > { %v1176_v52 = vpop.xlane.xlu2 %1175  ;;  %1630 = vperm.xlu1 %2255, %v1616_v29   ;;  %1635 = vperm.xlu2 %2256, %v1617_v38  }
 0x382   : > { %v1188_v27 = vadd.f32 %v1176_v52, %v1164_v33  ;;  %v1160_v33 = vld [vmem:[#allocation3 + $0x78] sm:$0xff] }
 0x383   : > { %v1168_v39 = vmul.f32 %v2964_v23, %v1160_v33  ;;  %v1202_v23 = vld [vmem:[#allocation4 + $0x8] sm:$0xff] }
 0x384   : > { %1196 = vst.msk [vmem:[#allocation3 + $0x58] sm:$0xff] %vm289_vm1, %v1188_v27 }
 0x386   : > { %v1344_v42 = vpop.f32.mrf.mxu3 }
 0x389   : > { %1364 = vrot.lane.b32.xlu1 %v1336_v22, %s2537_s1  ;;  %1366 = vrot.lane.b32.xlu2 %v1339_v1, %s2537_s1  ;;  %v1443_v43 = vpop.permute.xlu0 %1442 }
 0x38a   : > { %2322 = vrcp.f32 %v1443_v43  ;;  %v1511_v60 = vand.u32 2147483648, %v1443_v43  ;;  %vm1505_vm5 = vweird.f32 %v1443_v43  ;;  %v1509_v24 = vand.u32 2147483647, %v1443_v43 }
 0x38b   : > { %v1618_v2 = vld [vmem:[#allocation3 + $0x58] sm:$0xff] }
 0x38c   : > { %v1512_v38 = vor.u32 1.1754944e-38, %v1511_v60  ;;  %vm1510_vm10 = vcmp.eq.f32.partialorder %v1509_v24, 8.507059e+37 }
 0x38d   : > { %v3062_v13 = vpop.permute.xlu2 %1452 }
 0x38e   : > { %v1346_v45 = vpop.f32.mrf.mxu3 }
 0x390   : > { %v2323_v14 = vpop.eup %2322 }
 0x391   : > { %v1501_v49 = vmul.f32 %v2323_v14, %v1443_v43  ;;  %vm1506_vm3 = vweird.f32 %v2323_v14 }
 0x392   : > { %vm1507_vm6 = vmor %vm1505_vm5, %vm1506_vm3 }
 0x393   : > { %1625 = vperm.xlu0 %2257, %v1615_v21   ;;  %v1502_v63 = vsub.f32 1.0, %v1501_v49 }
 0x395   : > { %v1503_v48 = vmul.f32 %v2323_v14, %v1502_v63  ;;  %v1494_v63 = vand.u32 2147483647, %v3046_v54 }
 0x397   : > { %v1504_v30 = vadd.f32 %v2323_v14, %v1503_v48  ;;  %vm1495_vm5 = vcmp.eq.f32.partialorder %v1494_v63, 8.507059e+37 }
 0x399   : > { %v1508_v50 = vsel %vm1507_vm6, %v2323_v14, %v1504_v30  ;;  %vm1475_vm6 = vweird.f32 %v3037_v0 }
 0x39a   : > { %v1513_v1 = vsel %vm1510_vm10, %v1512_v38, %v1508_v50 }
 0x39b   : > { %1362 = vrot.lane.b32.xlu0 %v1334_v9, %s2537_s1 }
 0x39c   : > { %v1180_v46 = vpop.xlane.xlu1 %1179 }
 0x39d   : > { %v1190_v53 = vadd.f32 %v1180_v46, %v1166_v26 }
 0x39f   : > { %1198 = vst.msk [vmem:[#allocation3 + $0x68] sm:$0xff] %vm289_vm1, %v1190_v53 }
 0x3a3   : > { %1640 = vperm.xlu0 %2257, %v1618_v2  }
 0x3a6   : > { %v1620_v57 = vld [vmem:[#allocation3 + $0x68] sm:$0xff] }
 0x3a7   : > { %1650 = vperm.xlu2 %2256, %v1620_v57  }
 0x3ab   : > { %1368 = vrot.lane.b32.xlu0 %v1341_v58, %s2537_s1 }
 0x3af   : > { %1372 = vrot.lane.b32.xlu2 %v1346_v45, %s2537_s1 }
 0x3b4   : > { %v1178_v11 = vpop.xlane.xlu0 %1177  ;;  %v3075_v9 = vpop.permute.xlu1 %1462 }
 0x3b5   : > { %v1189_v47 = vadd.f32 %v1178_v11, %v1165_v25  ;;  %v1250_v25 = vmul.f32 %v2993_v12, %v1202_v23  ;;  %v1496_v12 = vand.u32 2147483648, %v3046_v54 }
 0x3b7   : > { %1197 = vst.msk [vmem:[#allocation3 + $0x60] sm:$0xff] %vm289_vm1, %v1189_v47 }
 0x3be   : > { %v1619_v59 = vld [vmem:[#allocation3 + $0x60] sm:$0xff] }
 0x3bf   : > { %1645 = vperm.xlu1 %2255, %v1619_v59  }
 0x3c7   : > { %1370 = vrot.lane.b32.xlu1 %v1344_v42, %s2537_s1  ;;  %v3072_v31 = vpop.permute.xlu0 %1457 }
 0x3c8   : > { %vm1550_vm10 = vweird.f32 %v3072_v31 }
 0x3cc   : > { %v1349_v28 = vpop.f32.mrf.mxu3 }
 0x3cf   : > { %v1182_v36 = vpop.xlane.xlu2 %1181 }
 0x3d0   : > { %v1191_v34 = vadd.f32 %v1182_v36, %v1167_v56 }
 0x3d2   : > { %1199 = vst.msk [vmem:[#allocation3 + $0x70] sm:$0xff] %vm289_vm1, %v1191_v34 }
 0x3d7   : > { %v3067_v44 = vpop.permute.xlu2 %1467 }
 0x3d9   : > { %v1621_v51 = vld [vmem:[#allocation3 + $0x70] sm:$0xff] }
 0x3da   : > { %1655 = vperm.xlu0 %2257, %v1621_v51  }
 0x3df   : > { %v1636_v10 = vpop.permute.xlu2 %1635 }
 0x3e0   : > { %2324 = vrcp.f32 %v1636_v10  ;;  %v1704_v7 = vand.u32 2147483648, %v1636_v10  ;;  %v1702_v18 = vand.u32 2147483647, %v1636_v10  ;;  %vm1698_vm7 = vweird.f32 %v1636_v10 }
 0x3e1   : > { %2326 = vrcp.f32 %v3046_v54 }
 0x3e2   : > { %1374 = vrot.lane.b32.xlu0 %v1349_v28, %s2537_s1  ;;  %v1705_v22 = vor.u32 1.1754944e-38, %v1704_v7  ;;  %vm1703_vm9 = vcmp.eq.f32.partialorder %v1702_v18, 8.507059e+37  ;;  %v1351_v7 = vpop.f32.mrf.mxu3 }
 0x3e6   : > { %v2325_v8 = vpop.eup %2324 }
 0x3e7   : > { %v1694_v32 = vmul.f32 %v2325_v8, %v1636_v10  ;;  %v1367_v55 = vpop.permute.xlu2 %1366  ;;  %vm1699_vm4 = vweird.f32 %v2325_v8  ;;  %v3077_v29 = vpop.eup %2326 }
 0x3e8   : > { %v1388_v4 = vadd.f32 %v1367_v55, %v1251_v61  ;;  %vm1700_vm8 = vmor %vm1698_vm7, %vm1699_vm4  ;;  %v1486_v26 = vmul.f32 %v3077_v29, %v3046_v54  ;;  %vm1491_vm13 = vweird.f32 %v3077_v29 }
 0x3e9   : > { %v1695_v6 = vsub.f32 1.0, %v1694_v32  ;;  %vm3107_vm0 = vmor %vm1490_vm15, %vm1491_vm13 }
 0x3ea   : > { %1397 = vst.msk [vmem:[#allocation4 + $0x10] sm:$0xff] %vm1394_vm2, %v1388_v4  ;;  %v1487_v45 = vsub.f32 1.0, %v1486_v26  ;;  %v1497_v4 = vor.u32 1.1754944e-38, %v1496_v12 }
 0x3eb   : > { %v1696_v37 = vmul.f32 %v2325_v8, %v1695_v6 }
 0x3ec   : > { %v1488_v11 = vmul.f32 %v3077_v29, %v1487_v45 }
 0x3ed   : > { %v1697_v17 = vadd.f32 %v2325_v8, %v1696_v37  ;;  %v1206_v37 = vld [vmem:[#allocation4 + $0x28] sm:$0xff] }
 0x3ee   : > { %v1489_v51 = vadd.f32 %v3077_v29, %v1488_v11 }
 0x3ef   : > { %v1701_v52 = vsel %vm1700_vm8, %v2325_v8, %v1697_v17 }
 0x3f0   : > { %v1706_v27 = vsel %vm1703_vm9, %v1705_v22, %v1701_v52  ;;  %v1493_v55 = vsel %vm3107_vm0, %v3077_v29, %v1489_v51  ;;  %v1201_v29 = vld [vmem:[#allocation4] sm:$0xff]  ;;  %v1254_v52 = vmul.f32 %v3021_v40, %v1206_v37  ;;  %v1481_v40 = vand.u32 2147483648, %v3037_v0 }
 0x3f1   : > { %v1416_v21 = vld [vmem:[#allocation4 + $0x10] sm:$0xff]  ;;  %v1498_v18 = vsel %vm1495_vm5, %v1497_v4, %v1493_v55 }
 0x3f2   : > { %v1514_v58 = vmul.f32 %v1513_v1, %v1416_v21  ;;  %v1707_v46 = vmul.f32 %v1706_v27, %v1416_v21  ;;  %v1184_v53 = vpop.xlane.xlu0 %1183 }
 0x3f3   : > { %v1192_v2 = vadd.f32 %v1184_v53, %v1168_v39  ;;  %v1631_v42 = vpop.permute.xlu1 %1630  ;;  %v1479_v53 = vand.u32 2147483647, %v3037_v0 }
 0x3f4   : > { %v1592_v57 = vpack.c.bf16 %v1514_v58, %v1514_v58  ;;  %v1785_v43 = vpack.c.bf16 %v1707_v46, %v1707_v46  ;;  %2328 = vrcp.f32 %v1631_v42  ;;  %v1689_v14 = vand.u32 2147483648, %v1631_v42 }
 0x3f5   : > { %1200 = vst.msk [vmem:[#allocation3 + $0x78] sm:$0xff] %vm289_vm1, %v1192_v2  ;;  %2330 = vrcp.f32 %v3072_v31  ;;  %v1687_v28 = vand.u32 2147483647, %v1631_v42  ;;  %vm1683_vm1 = vweird.f32 %v1631_v42  ;;  %v1249_v58 = vmul.f32 %v2988_v5, %v1201_v29 }
 0x3f6   : > { %1601 = vst.msk [vmem:[%s3085_s20 + $0x8] sm:$0xf] %vm1598_vm11, %v1592_v57  ;;  %2332 = vrcp.f32 %v3037_v0  ;;  %v1690_v54 = vor.u32 1.1754944e-38, %v1689_v14 }
 0x3f7   : > { %1794 = vst.msk [vmem:[%s3085_s20 + $0x8] sm:$0xf] %vm1791_vm12, %v1785_v43  ;;  %vm1688_vm4 = vcmp.eq.f32.partialorder %v1687_v28, 8.507059e+37 }
 0x3fa   : > { %v2329_v20 = vpop.eup %2328 }
 0x3fb   : > { %v1679_v47 = vmul.f32 %v2329_v20, %v1631_v42  ;;  %v1365_v59 = vpop.permute.xlu1 %1364  ;;  %v3095_v36 = vpop.eup %2330  ;;  %vm1684_vm14 = vweird.f32 %v2329_v20  ;;  %v1556_v42 = vand.u32 2147483648, %v3072_v31 }
 0x3fc   : > { %v1387_v19 = vadd.f32 %v1365_v59, %v1250_v25  ;;  %v1622_v56 = vld [vmem:[#allocation3 + $0x78] sm:$0xff]  ;;  %v3100_v49 = vpop.eup %2332  ;;  %v1546_v35 = vmul.f32 %v3095_v36, %v3072_v31  ;;  %vm1685_vm3 = vmor %vm1683_vm1, %vm1684_vm14  ;;  %vm1551_vm7 = vweird.f32 %v3095_v36  ;;  %v1554_v59 = vand.u32 2147483647, %v3072_v31 }
 0x3fd   : > { %v1680_v34 = vsub.f32 1.0, %v1679_v47  ;;  %1660 = vperm.xlu1 %2255, %v1622_v56   ;;  %v1471_v32 = vmul.f32 %v3100_v49, %v3037_v0  ;;  %vm1476_vm8 = vweird.f32 %v3100_v49  ;;  %vm3147_vm13 = vmor %vm1550_vm10, %vm1551_vm7 }
 0x3fe   : > { %1396 = vst.msk [vmem:[#allocation4 + $0x8] sm:$0xff] %vm1394_vm2, %v1387_v19  ;;  %v1547_v30 = vsub.f32 1.0, %v1546_v35 }
 0x3ff   : > { %v1681_v10 = vmul.f32 %v2329_v20, %v1680_v34  ;;  %v1472_v50 = vsub.f32 1.0, %v1471_v32  ;;  %v1557_v34 = vor.u32 1.1754944e-38, %v1556_v42  ;;  %v1526_v42 = vand.u32 2147483648, %v3053_v15 }
 0x400   : > { %v1548_v27 = vmul.f32 %v3095_v36, %v1547_v30 }
 0x401   : > { %v1682_v61 = vadd.f32 %v2329_v20, %v1681_v10  ;;  %v3111_v48 = vpop.permute.xlu2 %1650  ;;  %v1473_v46 = vmul.f32 %v3100_v49, %v1472_v50 }
 0x402   : > { %2334 = vrcp.f32 %v3111_v48  ;;  %v1549_v5 = vadd.f32 %v3095_v36, %v1548_v27  ;;  %v1747_v45 = vand.u32 2147483647, %v3111_v48  ;;  %v1749_v23 = vand.u32 2147483648, %v3111_v48  ;;  %v1204_v27 = vld [vmem:[#allocation4 + $0x18] sm:$0xff] }
 0x403   : > { %v1686_v6 = vsel %vm1685_vm3, %v2329_v20, %v1682_v61  ;;  %v1474_v47 = vadd.f32 %v3100_v49, %v1473_v46  ;;  %vm1743_vm14 = vweird.f32 %v3111_v48  ;;  %vm3164_vm3 = vmor %vm1475_vm6, %vm1476_vm8  ;;  %vm1480_vm6 = vcmp.eq.f32.partialorder %v1479_v53, 8.507059e+37 }
 0x404   : > { %v1691_v60 = vsel %vm1688_vm4, %v1690_v54, %v1686_v6  ;;  %v1553_v12 = vsel %vm3147_vm13, %v3095_v36, %v1549_v5  ;;  %vm1748_vm0 = vcmp.eq.f32.partialorder %v1747_v45, 8.507059e+37  ;;  %v1750_v10 = vor.u32 1.1754944e-38, %v1749_v23 }
 0x405   : > { %v1415_v24 = vld [vmem:[#allocation4 + $0x8] sm:$0xff]  ;;  %v3119_v17 = vpop.permute.xlu0 %1625  ;;  %1376 = vrot.lane.b32.xlu1 %v1351_v7, %s2537_s1  ;;  %vm1555_vm4 = vcmp.eq.f32.partialorder %v1554_v59, 8.507059e+37  ;;  %v1482_v7 = vor.u32 1.1754944e-38, %v1481_v40  ;;  %vm1520_vm13 = vweird.f32 %v3053_v15 }
 0x406   : > { %v1499_v22 = vmul.f32 %v1498_v18, %v1415_v24  ;;  %v1692_v33 = vmul.f32 %v1691_v60, %v1415_v24  ;;  %2336 = vrcp.f32 %v3119_v17  ;;  %v1674_v28 = vand.u32 2147483648, %v3119_v17 }
 0x407   : > { %2338 = vrcp.f32 %v3053_v15  ;;  %v1672_v8 = vand.u32 2147483647, %v3119_v17  ;;  %v1558_v32 = vsel %vm1555_vm4, %v1557_v34, %v1553_v12  ;;  %vm1668_vm5 = vweird.f32 %v3119_v17 }
 0x408   : > { %v2335_v38 = vpop.eup %2334  ;;  %v1591_v1 = vpack.c.bf16 %v1499_v22, %v1499_v22  ;;  %v1784_v21 = vpack.c.bf16 %v1692_v33, %v1692_v33  ;;  %v1675_v0 = vor.u32 1.1754944e-38, %v1674_v28  ;;  %v1205_v28 = vld [vmem:[#allocation4 + $0x20] sm:$0xff] }
 0x409   : > { %v1739_v39 = vmul.f32 %v2335_v38, %v3111_v48  ;;  %v1373_v26 = vpop.permute.xlu2 %1372  ;;  %vm1744_vm9 = vweird.f32 %v2335_v38  ;;  %v1478_v48 = vsel %vm3164_vm3, %v3100_v49, %v1474_v47  ;;  %vm1673_vm8 = vcmp.eq.f32.partialorder %v1672_v8, 8.507059e+37 }
 0x40a   : > { %1600 = vst.msk [vmem:[%s3085_s20 + $0x4] sm:$0xf] %vm1598_vm11, %v1591_v1  ;;  %v1391_v2 = vadd.f32 %v1373_v26, %v1254_v52  ;;  %vm1745_vm15 = vmor %vm1743_vm14, %vm1744_vm9 }
 0x40b   : > { %v1740_v57 = vsub.f32 1.0, %v1739_v39  ;;  %1793 = vst.msk [vmem:[%s3085_s20 + $0x4] sm:$0xf] %vm1791_vm12, %v1784_v21  ;;  %v1252_v21 = vmul.f32 %v3029_v16, %v1204_v27  ;;  %v1207_v27 = vld [vmem:[#allocation4 + $0x30] sm:$0xff] }
 0x40c   : > { %v2337_v43 = vpop.eup %2336  ;;  %1400 = vst.msk [vmem:[#allocation4 + $0x28] sm:$0xff] %vm1394_vm2, %v1391_v2 }
 0x40d   : > { %v1741_v20 = vmul.f32 %v2335_v38, %v1740_v57  ;;  %v1664_v25 = vmul.f32 %v2337_v43, %v3119_v17  ;;  %v1363_v11 = vpop.permute.xlu0 %1362  ;;  %v3157_v31 = vpop.eup %2338  ;;  %vm1669_vm1 = vweird.f32 %v2337_v43  ;;  %v1483_v17 = vsel %vm1480_vm6, %v1482_v7, %v1478_v48 }
 0x40e   : > { %v1386_v19 = vadd.f32 %v1363_v11, %v1249_v58  ;;  %v1516_v4 = vmul.f32 %v3157_v31, %v3053_v15  ;;  %vm1670_vm7 = vmor %vm1668_vm5, %vm1669_vm1  ;;  %vm1521_vm9 = vweird.f32 %v3157_v31 }
 0x40f   : > { %v1742_v51 = vadd.f32 %v2335_v38, %v1741_v20  ;;  %v1665_v14 = vsub.f32 1.0, %v1664_v25  ;;  %vm1522_vm14 = vmor %vm1520_vm13, %vm1521_vm9  ;;  %v1527_v20 = vor.u32 1.1754944e-38, %v1526_v42  ;;  %v1571_v42 = vand.u32 2147483648, %v3075_v9 }
 0x410   : > { %1395 = vst.msk [vmem:[#allocation4] sm:$0xff] %vm1394_vm2, %v1386_v19  ;;  %v1517_v22 = vsub.f32 1.0, %v1516_v4 }
 0x411   : > { %v1746_v63 = vsel %vm1745_vm15, %v2335_v38, %v1742_v51  ;;  %v1666_v35 = vmul.f32 %v2337_v43, %v1665_v14 }
 0x412   : > { %v1751_v61 = vsel %vm1748_vm0, %v1750_v10, %v1746_v63  ;;  %v1518_v39 = vmul.f32 %v3157_v31, %v1517_v22  ;;  %v1253_v63 = vmul.f32 %v3035_v62, %v1205_v28 }
 0x413   : > { %v1667_v55 = vadd.f32 %v2337_v43, %v1666_v35  ;;  %v1419_v54 = vld [vmem:[#allocation4 + $0x28] sm:$0xff] }
 0x414   : > { %v1559_v6 = vmul.f32 %v1558_v32, %v1419_v54  ;;  %v1752_v30 = vmul.f32 %v1751_v61, %v1419_v54  ;;  %v1519_v2 = vadd.f32 %v3157_v31, %v1518_v39  ;;  %v1541_v54 = vand.u32 2147483648, %v3062_v13 }
 0x415   : > { %v1671_v60 = vsel %vm1670_vm7, %v2337_v43, %v1667_v55  ;;  %v1641_v37 = vpop.permute.xlu0 %1640  ;;  %v1524_v43 = vand.u32 2147483647, %v3053_v15  ;;  %vm1535_vm7 = vweird.f32 %v3062_v13 }
 0x416   : > { %v1676_v49 = vsel %vm1673_vm8, %v1675_v0, %v1671_v60  ;;  %v1595_v18 = vpack.c.bf16 %v1559_v6, %v1559_v6  ;;  %v1788_v24 = vpack.c.bf16 %v1752_v30, %v1752_v30  ;;  %2340 = vrcp.f32 %v1641_v37 }
 0x417   : > { %v1414_v50 = vld [vmem:[#allocation4] sm:$0xff]  ;;  %v1719_v40 = vand.u32 2147483648, %v1641_v37  ;;  %v1717_v57 = vand.u32 2147483647, %v1641_v37  ;;  %vm1713_vm15 = vweird.f32 %v1641_v37  ;;  %v1523_v45 = vsel %vm1522_vm14, %v3157_v31, %v1519_v2 }
 0x418   : > { %1604 = vst.msk [vmem:[%s3085_s20 + $0x14] sm:$0xf] %vm1598_vm11, %v1595_v18  ;;  %v1484_v33 = vmul.f32 %v1483_v17, %v1414_v50  ;;  %v1677_v29 = vmul.f32 %v1676_v49, %v1414_v50  ;;  %vm1525_vm3 = vcmp.eq.f32.partialorder %v1524_v43, 8.507059e+37  ;;  %2342 = vrcp.f32 %v3062_v13 }
 0x419   : > { %1797 = vst.msk [vmem:[%s3085_s20 + $0x14] sm:$0xf] %vm1791_vm12, %v1788_v24  ;;  %v1720_v23 = vor.u32 1.1754944e-38, %v1719_v40  ;;  %vm1718_vm1 = vcmp.eq.f32.partialorder %v1717_v57, 8.507059e+37  ;;  %v1528_v47 = vsel %vm1525_vm3, %v1527_v20, %v1523_v45  ;;  %v1539_v6 = vand.u32 2147483647, %v3062_v13 }
 0x41a   : > { %v1590_v38 = vpack.c.bf16 %v1484_v33, %v1484_v33  ;;  %v1783_v52 = vpack.c.bf16 %v1677_v29, %v1677_v29  ;;  %v1542_v60 = vor.u32 1.1754944e-38, %v1541_v54  ;;  %v1569_v43 = vand.u32 2147483647, %v3075_v9 }
 0x41b   : > { %vm1540_vm13 = vcmp.eq.f32.partialorder %v1539_v6, 8.507059e+37 }
 0x41c   : > { %v2341_v1 = vpop.eup %2340  ;;  %1599 = vst.msk [vmem:[%s3085_s20] sm:$0xf] %vm1598_vm11, %v1590_v38 }
 0x41d   : > { %v1709_v26 = vmul.f32 %v2341_v1, %v1641_v37  ;;  %v1369_v58 = vpop.permute.xlu0 %1368  ;;  %1792 = vst.msk [vmem:[%s3085_s20] sm:$0xf] %vm1791_vm12, %v1783_v52  ;;  %vm1714_vm10 = vweird.f32 %v2341_v1 }
 0x41e   : > { %v1389_v46 = vadd.f32 %v1369_v58, %v1252_v21  ;;  %vm1715_vm0 = vmor %vm1713_vm15, %vm1714_vm10  ;;  %v2343_v51 = vpop.eup %2342  ;;  %v1255_v21 = vmul.f32 %v3041_v3, %v1207_v27 }
 0x41f   : > { %v1710_v53 = vsub.f32 1.0, %v1709_v26  ;;  %v1531_v14 = vmul.f32 %v2343_v51, %v3062_v13  ;;  %vm1536_vm4 = vweird.f32 %v2343_v51 }
 0x420   : > { %1398 = vst.msk [vmem:[#allocation4 + $0x18] sm:$0xff] %vm1394_vm2, %v1389_v46  ;;  %vm1537_vm6 = vmor %vm1535_vm7, %vm1536_vm4  ;;  %vm1570_vm7 = vcmp.eq.f32.partialorder %v1569_v43, 8.507059e+37 }
 0x421   : > { %v1711_v16 = vmul.f32 %v2341_v1, %v1710_v53  ;;  %v1532_v10 = vsub.f32 1.0, %v1531_v14 }
 0x423   : > { %v1712_v5 = vadd.f32 %v2341_v1, %v1711_v16  ;;  %v1533_v35 = vmul.f32 %v2343_v51, %v1532_v10 }
 0x425   : > { %v1716_v25 = vsel %vm1715_vm0, %v2341_v1, %v1712_v5  ;;  %v1534_v32 = vadd.f32 %v2343_v51, %v1533_v35  ;;  %vm1565_vm0 = vweird.f32 %v3075_v9 }
 0x426   : > { %v1721_v11 = vsel %vm1718_vm1, %v1720_v23, %v1716_v25  ;;  %v1572_v23 = vor.u32 1.1754944e-38, %v1571_v42 }
 0x427   : > { %v1417_v59 = vld [vmem:[#allocation4 + $0x18] sm:$0xff]  ;;  %v1538_v30 = vsel %vm1537_vm6, %v2343_v51, %v1534_v32  ;;  %v1586_v32 = vand.u32 2147483648, %v3067_v44 }
 0x428   : > { %v1529_v19 = vmul.f32 %v1528_v47, %v1417_v59  ;;  %v1722_v15 = vmul.f32 %v1721_v11, %v1417_v59  ;;  %v1543_v18 = vsel %vm1540_vm13, %v1542_v60, %v1538_v30 }
 0x42a   : > { %v1593_v56 = vpack.c.bf16 %v1529_v19, %v1529_v19  ;;  %v1786_v34 = vpack.c.bf16 %v1722_v15, %v1722_v15 }
 0x42c   : > { %1602 = vst.msk [vmem:[%s3085_s20 + $0xc] sm:$0xf] %vm1598_vm11, %v1593_v56 }
 0x42d   : > { %1795 = vst.msk [vmem:[%s3085_s20 + $0xc] sm:$0xf] %vm1791_vm12, %v1786_v34 }
 0x431   : > { %v1646_v12 = vpop.permute.xlu1 %1645 }
 0x432   : > { %2344 = vrcp.f32 %v1646_v12  ;;  %v1734_v55 = vand.u32 2147483648, %v1646_v12  ;;  %v1732_v0 = vand.u32 2147483647, %v1646_v12  ;;  %vm1728_vm8 = vweird.f32 %v1646_v12 }
 0x433   : > { %2346 = vrcp.f32 %v3075_v9 }
 0x434   : > { %v1735_v7 = vor.u32 1.1754944e-38, %v1734_v55  ;;  %vm1733_vm10 = vcmp.eq.f32.partialorder %v1732_v0, 8.507059e+37 }
 0x438   : > { %v2345_v31 = vpop.eup %2344 }
 0x439   : > { %v1724_v8 = vmul.f32 %v2345_v31, %v1646_v12  ;;  %v1371_v36 = vpop.permute.xlu1 %1370  ;;  %vm1729_vm5 = vweird.f32 %v2345_v31  ;;  %v2347_v33 = vpop.eup %2346  ;;  %v1208_v12 = vld [vmem:[#allocation4 + $0x38] sm:$0xff] }
 0x43a   : > { %v1390_v61 = vadd.f32 %v1371_v36, %v1253_v63  ;;  %vm1730_vm9 = vmor %vm1728_vm8, %vm1729_vm5  ;;  %v1561_v29 = vmul.f32 %v2347_v33, %v3075_v9  ;;  %vm1566_vm14 = vweird.f32 %v2347_v33 }
 0x43b   : > { %v1725_v48 = vsub.f32 1.0, %v1724_v8  ;;  %vm1567_vm1 = vmor %vm1565_vm0, %vm1566_vm14 }
 0x43c   : > { %1399 = vst.msk [vmem:[#allocation4 + $0x20] sm:$0xff] %vm1394_vm2, %v1390_v61  ;;  %v1562_v52 = vsub.f32 1.0, %v1561_v29 }
 0x43d   : > { %v1726_v4 = vmul.f32 %v2345_v31, %v1725_v48 }
 0x43e   : > { %v1563_v39 = vmul.f32 %v2347_v33, %v1562_v52 }
 0x43f   : > { %v1727_v62 = vadd.f32 %v2345_v31, %v1726_v4  ;;  %v1584_v4 = vand.u32 2147483647, %v3067_v44 }
 0x440   : > { %v1564_v2 = vadd.f32 %v2347_v33, %v1563_v39 }
 0x441   : > { %v1731_v37 = vsel %vm1730_vm9, %v2345_v31, %v1727_v62  ;;  %v1256_v31 = vmul.f32 %v3025_v41, %v1208_v12  ;;  %vm1580_vm9 = vweird.f32 %v3067_v44  ;;  %v1587_v62 = vor.u32 1.1754944e-38, %v1586_v32 }
 0x442   : > { %v1736_v49 = vsel %vm1733_vm10, %v1735_v7, %v1731_v37  ;;  %v1568_v5 = vsel %vm1567_vm1, %v2347_v33, %v1564_v2 }
 0x443   : > { %v1418_v24 = vld [vmem:[#allocation4 + $0x20] sm:$0xff]  ;;  %v1573_v11 = vsel %vm1570_vm7, %v1572_v23, %v1568_v5 }
 0x444   : > { %v1544_v17 = vmul.f32 %v1543_v18, %v1418_v24  ;;  %v1737_v50 = vmul.f32 %v1736_v49, %v1418_v24 }
 0x446   : > { %v1594_v13 = vpack.c.bf16 %v1544_v17, %v1544_v17  ;;  %v1787_v22 = vpack.c.bf16 %v1737_v50, %v1737_v50 }
 0x448   : > { %1603 = vst.msk [vmem:[%s3085_s20 + $0x10] sm:$0xf] %vm1598_vm11, %v1594_v13 }
 0x449   : > { %1796 = vst.msk [vmem:[%s3085_s20 + $0x10] sm:$0xf] %vm1791_vm12, %v1787_v22 }
 0x44c   : > { %v1656_v38 = vpop.permute.xlu0 %1655 }
 0x44d   : > { %2348 = vrcp.f32 %v1656_v38  ;;  %v1764_v40 = vand.u32 2147483648, %v1656_v38  ;;  %v1762_v57 = vand.u32 2147483647, %v1656_v38  ;;  %vm1758_vm3 = vweird.f32 %v1656_v38 }
 0x44e   : > { %2350 = vrcp.f32 %v3067_v44 }
 0x44f   : > { %v1765_v45 = vor.u32 1.1754944e-38, %v1764_v40  ;;  %vm1763_vm5 = vcmp.eq.f32.partialorder %v1762_v57, 8.507059e+37 }
 0x453   : > { %v2349_v1 = vpop.eup %2348 }
 0x454   : > { %v1754_v26 = vmul.f32 %v2349_v1, %v1656_v38  ;;  %v1375_v58 = vpop.permute.xlu0 %1374  ;;  %vm1759_vm15 = vweird.f32 %v2349_v1  ;;  %v2351_v9 = vpop.eup %2350 }
 0x455   : > { %v1392_v46 = vadd.f32 %v1375_v58, %v1255_v21  ;;  %vm1760_vm4 = vmor %vm1758_vm3, %vm1759_vm15  ;;  %v1576_v34 = vmul.f32 %v2351_v9, %v3067_v44  ;;  %vm1581_vm6 = vweird.f32 %v2351_v9  ;;  %vm1585_vm15 = vcmp.eq.f32.partialorder %v1584_v4, 8.507059e+37 }
 0x456   : > { %v1755_v53 = vsub.f32 1.0, %v1754_v26  ;;  %vm1582_vm10 = vmor %vm1580_vm9, %vm1581_vm6 }
 0x457   : > { %1401 = vst.msk [vmem:[#allocation4 + $0x30] sm:$0xff] %vm1394_vm2, %v1392_v46  ;;  %v1577_v14 = vsub.f32 1.0, %v1576_v34 }
 0x458   : > { %v1756_v16 = vmul.f32 %v2349_v1, %v1755_v53 }
 0x459   : > { %v1578_v28 = vmul.f32 %v2351_v9, %v1577_v14 }
 0x45a   : > { %v1757_v3 = vadd.f32 %v2349_v1, %v1756_v16 }
 0x45b   : > { %v1579_v61 = vadd.f32 %v2351_v9, %v1578_v28 }
 0x45c   : > { %v1761_v20 = vsel %vm1760_vm4, %v2349_v1, %v1757_v3 }
 0x45d   : > { %v1766_v25 = vsel %vm1763_vm5, %v1765_v45, %v1761_v20  ;;  %v1583_v0 = vsel %vm1582_vm10, %v2351_v9, %v1579_v61 }
 0x45e   : > { %v1420_v47 = vld [vmem:[#allocation4 + $0x30] sm:$0xff]  ;;  %v1588_v7 = vsel %vm1585_vm15, %v1587_v62, %v1583_v0 }
 0x45f   : > { %v1574_v59 = vmul.f32 %v1573_v11, %v1420_v47  ;;  %v1767_v19 = vmul.f32 %v1766_v25, %v1420_v47 }
 0x461   : > { %v1596_v15 = vpack.c.bf16 %v1574_v59, %v1574_v59  ;;  %v1789_v56 = vpack.c.bf16 %v1767_v19, %v1767_v19 }
 0x463   : > { %1605 = vst.msk [vmem:[%s3085_s20 + $0x18] sm:$0xf] %vm1598_vm11, %v1596_v15 }
 0x464   : > { %1798 = vst.msk [vmem:[%s3085_s20 + $0x18] sm:$0xf] %vm1791_vm12, %v1789_v56 }
 0x46f   : > { %v1661_v51 = vpop.permute.xlu1 %1660 }
 0x470   : > { %2352 = vrcp.f32 %v1661_v51  ;;  %v1779_v48 = vand.u32 2147483648, %v1661_v51  ;;  %v1777_v54 = vand.u32 2147483647, %v1661_v51  ;;  %vm1773_vm13 = vweird.f32 %v1661_v51 }
 0x472   : > { %v1780_v6 = vor.u32 1.1754944e-38, %v1779_v48 }
 0x476   : > { %v2353_v10 = vpop.eup %2352 }
 0x477   : > { %v1769_v63 = vmul.f32 %v2353_v10, %v1661_v51  ;;  %v1377_v35 = vpop.permute.xlu1 %1376  ;;  %vm1774_vm8 = vweird.f32 %v2353_v10 }
 0x478   : > { %v1393_v8 = vadd.f32 %v1377_v35, %v1256_v31  ;;  %vm1775_vm14 = vmor %vm1773_vm13, %vm1774_vm8 }
 0x479   : > { %v1770_v36 = vsub.f32 1.0, %v1769_v63 }
 0x47a   : > { %1402 = vst.msk [vmem:[#allocation4 + $0x38] sm:$0xff] %vm1394_vm2, %v1393_v8  ;;  %vm1778_vm2 = vcmp.eq.f32.partialorder %v1777_v54, 8.507059e+37 }
 0x47b   : > { %v1771_v55 = vmul.f32 %v2353_v10, %v1770_v36 }
 0x47d   : > { %v1772_v41 = vadd.f32 %v2353_v10, %v1771_v55 }
 0x47f   : > { %v1776_v30 = vsel %vm1775_vm14, %v2353_v10, %v1772_v41 }
 0x480   : > { %v1781_v44 = vsel %vm1778_vm2, %v1780_v6, %v1776_v30 }
 0x481   : > { %v1421_v60 = vld [vmem:[#allocation4 + $0x38] sm:$0xff] }
 0x482   : > { %v1589_v37 = vmul.f32 %v1588_v7, %v1421_v60  ;;  %v1782_v49 = vmul.f32 %v1781_v44, %v1421_v60 }
 0x484   : > { %v1597_v18 = vpack.c.bf16 %v1589_v37, %v1589_v37  ;;  %v1790_v24 = vpack.c.bf16 %v1782_v49, %v1782_v49 }
 0x486   : > { %1606 = vst.msk [vmem:[%s3085_s20 + $0x1c] sm:$0xf] %vm1598_vm11, %v1597_v18 }
 0x487   : > { %1799 = vst.msk [vmem:[%s3085_s20 + $0x1c] sm:$0xf] %vm1791_vm12, %v1790_v24 }
 0x488   : > { %2471 = shalt.err (!%p2468_p0)
}
 0x489   : > { %s2541_s19 = smov 4  }
 0x48a   : > { %2174 = dma.vmem_to_hbm [thread:$0]  (%p2644_p3), %s1815_s15, 512, %s1817_s9, %s1801_s28, %s2537_s1, %s2537_s1, %s2541_s19  }
 0x48b PF: > { %s1831_s4 = sand.u32 1, %s2510_s12   ;;  %p2188_p5 = pnand %p1939_p11, %p2611_p6 }
 0x48c   : > { %s1832_s26 = scalar_lea.sflag [#allocation7], %s1831_s4 }
 0x48d   : > { %p2189_p7 = pneg %p2188_p5 }
 0x48f   : > { %2505 = dma.done.wait (%p2189_p7), %s1832_s26, 512  }
 0x490   : > { %2507 = vsyncadd (%p2189_p7), %s1832_s26, 4294966784  ;;  %s20_s17 = sadd.s32 1, %s2530_s17   ;;  %s3292_s12 = smov %s2514_s13 }
 0x491   : > { %p17_p9 = scmp.ge.s32.totalorder %s20_s17, 4   ;;  %s3293_s13 = smov %s2518_s14 }
 0x492   : > { %s3294_s14 = smov %s2660_s21  ;;  %s3295_s15 = smov %s2526_s16 }
 0x493   : > { %s3296_s16 = smov %s3298_s24  ;;  %19 = sbr.rel (!%p17_p9) target bundleno = 9 (0x9), region = 97 }
 0x498   :  { %1838 = vsyncpa [#allocation6], 1 }
 0x499   :  { %1840 = vsyncpa [#allocation6 + $0x1], 1 }
 0x49a   :  { %1841 = vsyncpa [#allocation9], 1 }
 0x49b   :  { %1842 = vsyncpa [#allocation7], 1 }
 0x49c   :  { %1844 = vsyncpa [#allocation7 + $0x1], 1 }

</bundles_post_ra>
